<compile_context>
chip_gen: v7x
topology: tpu7x:2x2x1
jax: 0.10.0
libtpu: 0.0.40
codegen_flags: <defaults>
</compile_context>

<pallas_src>
import jax
import jax.numpy as jnp
import numpy as np
from jax import lax
from jax.experimental import pallas as pl
from jax.experimental.pallas import tpu as pltpu

# ---------------- ConvE config (small, deterministic) ----------------
NUM_ENTITIES = 16
NUM_RELATIONS = 8
EMBEDDING_DIM = 32
IMG_H = 4
IMG_W = 8                        # IMG_H * IMG_W == EMBEDDING_DIM
IN_CH = 1
OUT_CH = 4
KH = 3
KW = 3
HOUT = 2 * IMG_H - KH + 1        # 6
WOUT = IMG_W - KW + 1            # 6
HW = HOUT * WOUT                 # 36
KK = KH * KW                     # 9
NUM_FEATS = OUT_CH * HW          # 144 (fc input features)
IMG_SZ = 2 * IMG_H * IMG_W       # 64 (flattened stacked image per sample)
FCB_ROW = 8                      # sublane-aligned offset of fc bias in aux_col
BN_EPS = 1e-5


def _build_conv_select():
    """Static 0/1 tensor S[k, p, q] = 1 iff kernel tap k at output position p
    reads flattened stacked-image position q (valid conv, stride 1)."""
    s = np.zeros((KK, HW, IMG_SZ), np.float32)
    for dh in range(KH):
        for dw in range(KW):
            k = dh * KW + dw
            for i in range(HOUT):
                for j in range(WOUT):
                    p = i * WOUT + j
                    q = (i + dh) * IMG_W + (j + dw)
                    s[k, p, q] = 1.0
    return s


CONV_SELECT_NP = _build_conv_select()


# ---------------------------- Pallas kernel ----------------------------
def conv_e_kernel(img_ref, toep_ref, fcw_ref, aux_col_ref, aux_row_ref, out_ref):
    f32 = jnp.float32
    B = img_ref.shape[1]

    # ---- bn0: BatchNorm2d over the single stacked input channel (batch stats)
    img = img_ref[...]                                        # (IMG_SZ, B)
    mu0 = jnp.mean(img, keepdims=True)                        # (1, 1)
    var0 = jnp.mean((img - mu0) ** 2, keepdims=True)
    pn = (img - mu0) * lax.rsqrt(var0 + BN_EPS)               # gamma=1, beta=0
    # inp_drop(p=0) is the identity.

    # ---- conv1 (valid, stride 1) as ONE matmul: Toeplitz (F, 64) @ (64, B)
    conv = jnp.dot(toep_ref[...], pn, preferred_element_type=f32)   # (F, B)

    # Channel-of-feature indicator matrices, built from iota (no loops/gathers).
    rf = lax.broadcasted_iota(jnp.int32, (NUM_FEATS, OUT_CH), 0)
    cf = lax.broadcasted_iota(jnp.int32, (NUM_FEATS, OUT_CH), 1)
    ind_fc = ((rf >= cf * HW) & (rf < (cf + 1) * HW)).astype(f32)    # (F, C)
    rc = lax.broadcasted_iota(jnp.int32, (OUT_CH, NUM_FEATS), 0)
    cc = lax.broadcasted_iota(jnp.int32, (OUT_CH, NUM_FEATS), 1)
    ind_cf = ((cc >= rc * HW) & (cc < (rc + 1) * HW)).astype(f32)    # (C, F)

    # conv bias per output channel, broadcast to feature rows.
    conv_b = aux_col_ref[0:OUT_CH, :]                                # (C, 1)
    conv = conv + jnp.dot(ind_fc, conv_b, preferred_element_type=f32)

    # ---- bn1 per output channel over (batch, H_out, W_out); relu; fm_drop=id
    n1 = jnp.float32(HW * B)
    mean_c = jnp.sum(jnp.dot(ind_cf, conv, preferred_element_type=f32),
                     axis=1, keepdims=True) / n1                     # (C, 1)
    centered = conv - jnp.dot(ind_fc, mean_c, preferred_element_type=f32)
    var_c = jnp.sum(jnp.dot(ind_cf, centered * centered,
                            preferred_element_type=f32),
                    axis=1, keepdims=True) / n1                      # (C, 1)
    scale_f = jnp.dot(ind_fc, lax.rsqrt(var_c + BN_EPS),
                      preferred_element_type=f32)                    # (F, 1)
    feats = jnp.maximum(centered * scale_f, 0.0)                     # (F, B)

    # ---- fc: ONE matmul (D, F) @ (F, B) + bias; hidden_drop(p=0) = identity
    x = jnp.dot(fcw_ref[...], feats, preferred_element_type=f32)     # (D, B)
    x = x + aux_col_ref[FCB_ROW:FCB_ROW + EMBEDDING_DIM, :]          # (D, 1)

    # ---- bn2 (only when batch_size > 1, static) + relu
    if B > 1:
        m2 = jnp.mean(x, axis=1, keepdims=True)                      # (D, 1)
        v2 = jnp.mean((x - m2) ** 2, axis=1, keepdims=True)
        x = (x - m2) * lax.rsqrt(v2 + BN_EPS)
    x = jnp.maximum(x, 0.0)

    # ---- scores[b] = sum_j <x[b], tails[j]> = <x[b], sum_j tails[j]>  (matvec)
    tails_sum = aux_row_ref[0:1, :]                                  # (1, D)
    scores = jnp.dot(tails_sum, x, preferred_element_type=f32)       # (1, B)
    preds = jax.nn.sigmoid(scores)

    # ---- BCE(mean), logits-stable:  max(s,0) - s*y + log1p(exp(-|s|))
    y = aux_row_ref[1:2, 0:B]                                        # (1, B)
    bce = (jnp.maximum(scores, 0.0) - scores * y
           + jnp.log1p(jnp.exp(-jnp.abs(scores))))
    loss = jnp.mean(bce, keepdims=True)                              # (1, 1)

    # ---- single packed output row: preds in lanes [0, B), loss in lane B
    out_ref[0:1, 0:B] = preds
    out_ref[0:1, B:B + 1] = loss


# ------------------------------ Wrapper --------------------------------
def conv_e_forward(params, triples, labels):
    B = triples.shape[0]
    # Glue: embedding lookups (gather), stacking/flattening, weight layout prep.
    heads = params["ent_emb"][triples[:, 0]]                         # (B, D)
    rels = params["rel_emb"][triples[:, 1]]                          # (B, D)
    tails = params["ent_emb"][triples[:, 2]]                         # (B, D)

    h_img = heads.reshape(B, IMG_H, IMG_W)
    r_img = rels.reshape(B, IMG_H, IMG_W)
    stacked = jnp.concatenate([h_img, r_img], axis=1)                # (B, 2H, W)
    img_flat = stacked.reshape(B, IMG_SZ).T                          # (64, B)

    # conv1 as a Toeplitz matrix (weight-only preprocessing, done once):
    # toep[c*HW + i*WOUT + j, h*W + w] = conv_w[c, 0, h - i, w - j].
    w_ck = params["conv_w"].reshape(OUT_CH, KK)
    toep = jnp.einsum("ck,kpq->cpq", w_ck,
                      jnp.asarray(CONV_SELECT_NP)).reshape(NUM_FEATS, IMG_SZ)

    fc_w = params["fc_w"]                                            # (D, F), (c,i,j) order

    # Consolidated tiny operands: one column buffer (biases), one row buffer
    # (tails column-sum + labels) -> 5 input DMAs total.
    aux_col = jnp.zeros((FCB_ROW + EMBEDDING_DIM, 1), jnp.float32)
    aux_col = aux_col.at[0:OUT_CH, 0].set(params["conv_b"])
    aux_col = aux_col.at[FCB_ROW:FCB_ROW + EMBEDDING_DIM, 0].set(params["fc_b"])

    tails_sum = jnp.sum(tails, axis=0)                               # (D,)
    aux_row = jnp.zeros((2, EMBEDDING_DIM), jnp.float32)
    aux_row = aux_row.at[0, :].set(tails_sum)
    aux_row = aux_row.at[1, 0:B].set(labels.astype(jnp.float32))

    vmem = pl.BlockSpec(memory_space=pltpu.MemorySpace.VMEM)
    out = pl.pallas_call(
        conv_e_kernel,
        out_shape=jax.ShapeDtypeStruct((1, 128), jnp.float32),
        in_specs=[vmem] * 5,
        out_specs=vmem,
    )(img_flat, toep, fc_w, aux_col, aux_row)

    preds = out[0, 0:B]
    loss = out[0, B]
    return loss, preds


# ------------------------- Pure-JAX reference --------------------------
def conv_e_reference(params, triples, labels):
    B = triples.shape[0]
    heads = params["ent_emb"][triples[:, 0]].reshape(B, 1, IMG_H, IMG_W)
    rels = params["rel_emb"][triples[:, 1]].reshape(B, 1, IMG_H, IMG_W)
    tails = params["ent_emb"][triples[:, 2]]

    def bn(z, axes):
        m = jnp.mean(z, axis=axes, keepdims=True)
        v = jnp.mean((z - m) ** 2, axis=axes, keepdims=True)
        return (z - m) * lax.rsqrt(v + BN_EPS)

    x = jnp.concatenate([heads, rels], axis=2)                       # (B,1,2H,W)
    x = bn(x, (0, 2, 3))
    x = lax.conv_general_dilated(x, params["conv_w"], (1, 1), "VALID",
                                 dimension_numbers=("NCHW", "OIHW", "NCHW"))
    x = x + params["conv_b"].reshape(1, OUT_CH, 1, 1)
    x = bn(x, (0, 2, 3))
    x = jnp.maximum(x, 0.0)
    x = x.reshape(B, -1)
    x = x @ params["fc_w"].T + params["fc_b"]
    x = bn(x, (0,))
    x = jnp.maximum(x, 0.0)
    scores = jnp.sum(x @ tails.T, axis=1)
    preds = jax.nn.sigmoid(scores)
    loss = jnp.mean(-(labels * jnp.log(preds) +
                      (1.0 - labels) * jnp.log(1.0 - preds)))
    return loss, preds


# -------------------------------- Main ---------------------------------
if __name__ == "__main__":
    key = jax.random.PRNGKey(0)
    k1, k2, k3, k4, k5, k6 = jax.random.split(key, 6)
    params = {
        "ent_emb": jax.random.normal(k1, (NUM_ENTITIES, EMBEDDING_DIM), jnp.float32) * 0.3,
        "rel_emb": jax.random.normal(k2, (NUM_RELATIONS, EMBEDDING_DIM), jnp.float32) * 0.3,
        "conv_w": jax.random.normal(k3, (OUT_CH, IN_CH, KH, KW), jnp.float32) * 0.2,
        "conv_b": jax.random.normal(k4, (OUT_CH,), jnp.float32) * 0.1,
        "fc_w": jax.random.normal(k5, (EMBEDDING_DIM, NUM_FEATS), jnp.float32) * 0.1,
        "fc_b": jax.random.normal(k6, (EMBEDDING_DIM,), jnp.float32) * 0.1,
        # TODO(synk): the 'b' Parameter (num_entities,) is registered in __init__
        # but never used in forward(); omitted.
    }

    triples = jnp.array([[0, 1, 5],
                         [3, 2, 7],
                         [8, 0, 1],
                         [12, 4, 9]], dtype=jnp.int32)               # (B=4, 3)
    labels = jnp.array([1.0, 0.0, 1.0, 0.0], dtype=jnp.float32)      # (B,)

    loss, preds = conv_e_forward(params, triples, labels)
    jax.block_until_ready((loss, preds))

    ref_loss, ref_preds = conv_e_reference(params, triples, labels)
    np.testing.assert_allclose(np.asarray(preds), np.asarray(ref_preds),
                               rtol=2e-2, atol=2e-2)
    np.testing.assert_allclose(float(loss), float(ref_loss),
                               rtol=2e-2, atol=2e-2)
    print("KERNEL_OK")
</pallas_src>

<mosaic_0001>
module attributes {stable_mosaic.version = 11 : i64} {
  func.func @conv_e_kernel(%arg0: memref<64x4xf32, #tpu.memory_space<vmem>>, %arg1: memref<144x64xf32, #tpu.memory_space<vmem>>, %arg2: memref<32x144xf32, #tpu.memory_space<vmem>>, %arg3: memref<40x1xf32, #tpu.memory_space<vmem>>, %arg4: memref<2x32xf32, #tpu.memory_space<vmem>>, %arg5: memref<1x128xf32, #tpu.memory_space<vmem>>) attributes {dimension_semantics = [], scalar_prefetch = 0 : i64, scratch_operands = 0 : i64, tpu.core_type = #tpu.core_type<tc>} {
    %c0 = arith.constant 0 : index
    %c0_0 = arith.constant 0 : index
    %0 = vector.load %arg0[%c0, %c0_0] : memref<64x4xf32, #tpu.memory_space<vmem>>, vector<64x4xf32>
    %1 = vector.shape_cast %0 : vector<64x4xf32> to vector<1x64x4xf32>
    %cst = arith.constant dense<0.000000e+00> : vector<1xf32>
    %2 = vector.multi_reduction <add>, %1, %cst [1, 2] : vector<1x64x4xf32> to vector<1xf32>
    %3 = vector.shape_cast %2 : vector<1xf32> to vector<1x1x1xf32>
    %4 = vector.extract %3[0, 0, 0] : f32 from vector<1x1x1xf32>
    %5 = vector.broadcast %4 : f32 to vector<1x1xf32>
    %cst_1 = arith.constant 2.560000e+02 : f32
    %6 = vector.broadcast %cst_1 : f32 to vector<1x1xf32>
    %7 = arith.divf %5, %6 : vector<1x1xf32>
    %8 = vector.broadcast %7 : vector<1x1xf32> to vector<64x4xf32>
    %9 = arith.subf %0, %8 : vector<64x4xf32>
    %10 = arith.mulf %9, %9 : vector<64x4xf32>
    %11 = vector.shape_cast %10 : vector<64x4xf32> to vector<1x64x4xf32>
    %cst_2 = arith.constant dense<0.000000e+00> : vector<1xf32>
    %12 = vector.multi_reduction <add>, %11, %cst_2 [1, 2] : vector<1x64x4xf32> to vector<1xf32>
    %13 = vector.shape_cast %12 : vector<1xf32> to vector<1x1x1xf32>
    %14 = vector.extract %13[0, 0, 0] : f32 from vector<1x1x1xf32>
    %15 = vector.broadcast %14 : f32 to vector<1x1xf32>
    %cst_3 = arith.constant 2.560000e+02 : f32
    %16 = vector.broadcast %cst_3 : f32 to vector<1x1xf32>
    %17 = arith.divf %15, %16 : vector<1x1xf32>
    %18 = vector.broadcast %7 : vector<1x1xf32> to vector<64x4xf32>
    %19 = arith.subf %0, %18 : vector<64x4xf32>
    %cst_4 = arith.constant 9.99999974E-6 : f32
    %20 = vector.broadcast %cst_4 : f32 to vector<1x1xf32>
    %21 = arith.addf %17, %20 : vector<1x1xf32>
    %22 = math.rsqrt %21 : vector<1x1xf32>
    %23 = vector.broadcast %22 : vector<1x1xf32> to vector<64x4xf32>
    %24 = arith.mulf %19, %23 : vector<64x4xf32>
    %c0_5 = arith.constant 0 : index
    %c0_6 = arith.constant 0 : index
    %25 = vector.load %arg1[%c0_5, %c0_6] : memref<144x64xf32, #tpu.memory_space<vmem>>, vector<144x64xf32>
    %cst_7 = arith.constant dense<0.000000e+00> : vector<144x4xf32>
    %26 = tpu.matmul %25, %24, %cst_7 {dimension_numbers = #tpu.dot_dimension_numbers<[1], [0], [0], [1], [0, 0, 1, 1], [], []>} : vector<144x64xf32>, vector<64x4xf32>, vector<144x4xf32> -> vector<144x4xf32>
    %27 = tpu.iota {dimensions = array<i32: 0>} : vector<144x4xi32>
    %28 = tpu.iota {dimensions = array<i32: 1>} : vector<144x4xi32>
    %c36_i32 = arith.constant 36 : i32
    %29 = vector.broadcast %c36_i32 : i32 to vector<144x4xi32>
    %30 = arith.muli %28, %29 : vector<144x4xi32>
    %31 = arith.cmpi sge, %27, %30 : vector<144x4xi32>
    %c1_i32 = arith.constant 1 : i32
    %32 = vector.broadcast %c1_i32 : i32 to vector<144x4xi32>
    %33 = arith.addi %28, %32 : vector<144x4xi32>
    %c36_i32_8 = arith.constant 36 : i32
    %34 = vector.broadcast %c36_i32_8 : i32 to vector<144x4xi32>
    %35 = arith.muli %33, %34 : vector<144x4xi32>
    %36 = arith.cmpi slt, %27, %35 : vector<144x4xi32>
    %37 = arith.andi %31, %36 : vector<144x4xi1>
    %38 = arith.extui %37 : vector<144x4xi1> to vector<144x4xi32>
    %39 = arith.sitofp %38 : vector<144x4xi32> to vector<144x4xf32>
    %40 = tpu.iota {dimensions = array<i32: 0>} : vector<4x144xi32>
    %41 = tpu.iota {dimensions = array<i32: 1>} : vector<4x144xi32>
    %c36_i32_9 = arith.constant 36 : i32
    %42 = vector.broadcast %c36_i32_9 : i32 to vector<4x144xi32>
    %43 = arith.muli %40, %42 : vector<4x144xi32>
    %44 = arith.cmpi sge, %41, %43 : vector<4x144xi32>
    %c1_i32_10 = arith.constant 1 : i32
    %45 = vector.broadcast %c1_i32_10 : i32 to vector<4x144xi32>
    %46 = arith.addi %40, %45 : vector<4x144xi32>
    %c36_i32_11 = arith.constant 36 : i32
    %47 = vector.broadcast %c36_i32_11 : i32 to vector<4x144xi32>
    %48 = arith.muli %46, %47 : vector<4x144xi32>
    %49 = arith.cmpi slt, %41, %48 : vector<4x144xi32>
    %50 = arith.andi %44, %49 : vector<4x144xi1>
    %51 = arith.extui %50 : vector<4x144xi1> to vector<4x144xi32>
    %52 = arith.sitofp %51 : vector<4x144xi32> to vector<4x144xf32>
    %c0_12 = arith.constant 0 : index
    %c0_13 = arith.constant 0 : index
    %53 = vector.load %arg3[%c0_12, %c0_13] : memref<40x1xf32, #tpu.memory_space<vmem>>, vector<4x1xf32>
    %cst_14 = arith.constant dense<0.000000e+00> : vector<144x1xf32>
    %54 = tpu.matmul %39, %53, %cst_14 {dimension_numbers = #tpu.dot_dimension_numbers<[1], [0], [0], [1], [0, 0, 1, 1], [], []>} : vector<144x4xf32>, vector<4x1xf32>, vector<144x1xf32> -> vector<144x1xf32>
    %55 = vector.broadcast %54 : vector<144x1xf32> to vector<144x4xf32>
    %56 = arith.addf %26, %55 : vector<144x4xf32>
    %cst_15 = arith.constant dense<0.000000e+00> : vector<4x4xf32>
    %57 = tpu.matmul %52, %56, %cst_15 {dimension_numbers = #tpu.dot_dimension_numbers<[1], [0], [0], [1], [0, 0, 1, 1], [], []>} : vector<4x144xf32>, vector<144x4xf32>, vector<4x4xf32> -> vector<4x4xf32>
    %cst_16 = arith.constant dense<0.000000e+00> : vector<4xf32>
    %58 = vector.multi_reduction <add>, %57, %cst_16 [1] : vector<4x4xf32> to vector<4xf32>
    %59 = vector.shape_cast %58 : vector<4xf32> to vector<4x1xf32>
    %cst_17 = arith.constant 1.440000e+02 : f32
    %60 = vector.broadcast %cst_17 : f32 to vector<4x1xf32>
    %61 = arith.divf %59, %60 : vector<4x1xf32>
    %cst_18 = arith.constant dense<0.000000e+00> : vector<144x1xf32>
    %62 = tpu.matmul %39, %61, %cst_18 {dimension_numbers = #tpu.dot_dimension_numbers<[1], [0], [0], [1], [0, 0, 1, 1], [], []>} : vector<144x4xf32>, vector<4x1xf32>, vector<144x1xf32> -> vector<144x1xf32>
    %63 = vector.broadcast %62 : vector<144x1xf32> to vector<144x4xf32>
    %64 = arith.subf %56, %63 : vector<144x4xf32>
    %65 = arith.mulf %64, %64 : vector<144x4xf32>
    %cst_19 = arith.constant dense<0.000000e+00> : vector<4x4xf32>
    %66 = tpu.matmul %52, %65, %cst_19 {dimension_numbers = #tpu.dot_dimension_numbers<[1], [0], [0], [1], [0, 0, 1, 1], [], []>} : vector<4x144xf32>, vector<144x4xf32>, vector<4x4xf32> -> vector<4x4xf32>
    %cst_20 = arith.constant dense<0.000000e+00> : vector<4xf32>
    %67 = vector.multi_reduction <add>, %66, %cst_20 [1] : vector<4x4xf32> to vector<4xf32>
    %68 = vector.shape_cast %67 : vector<4xf32> to vector<4x1xf32>
    %cst_21 = arith.constant 1.440000e+02 : f32
    %69 = vector.broadcast %cst_21 : f32 to vector<4x1xf32>
    %70 = arith.divf %68, %69 : vector<4x1xf32>
    %cst_22 = arith.constant 9.99999974E-6 : f32
    %71 = vector.broadcast %cst_22 : f32 to vector<4x1xf32>
    %72 = arith.addf %70, %71 : vector<4x1xf32>
    %73 = math.rsqrt %72 : vector<4x1xf32>
    %cst_23 = arith.constant dense<0.000000e+00> : vector<144x1xf32>
    %74 = tpu.matmul %39, %73, %cst_23 {dimension_numbers = #tpu.dot_dimension_numbers<[1], [0], [0], [1], [0, 0, 1, 1], [], []>} : vector<144x4xf32>, vector<4x1xf32>, vector<144x1xf32> -> vector<144x1xf32>
    %75 = vector.broadcast %74 : vector<144x1xf32> to vector<144x4xf32>
    %76 = arith.mulf %64, %75 : vector<144x4xf32>
    %cst_24 = arith.constant 0.000000e+00 : f32
    %77 = vector.broadcast %cst_24 : f32 to vector<144x4xf32>
    %78 = arith.maximumf %76, %77 : vector<144x4xf32>
    %c0_25 = arith.constant 0 : index
    %c0_26 = arith.constant 0 : index
    %79 = vector.load %arg2[%c0_25, %c0_26] : memref<32x144xf32, #tpu.memory_space<vmem>>, vector<32x144xf32>
    %cst_27 = arith.constant dense<0.000000e+00> : vector<32x4xf32>
    %80 = tpu.matmul %79, %78, %cst_27 {dimension_numbers = #tpu.dot_dimension_numbers<[1], [0], [0], [1], [0, 0, 1, 1], [], []>} : vector<32x144xf32>, vector<144x4xf32>, vector<32x4xf32> -> vector<32x4xf32>
    %c8 = arith.constant 8 : index
    %c0_28 = arith.constant 0 : index
    %81 = vector.load %arg3[%c8, %c0_28] : memref<40x1xf32, #tpu.memory_space<vmem>>, vector<32x1xf32>
    %82 = vector.broadcast %81 : vector<32x1xf32> to vector<32x4xf32>
    %83 = arith.addf %80, %82 : vector<32x4xf32>
    %cst_29 = arith.constant dense<0.000000e+00> : vector<32xf32>
    %84 = vector.multi_reduction <add>, %83, %cst_29 [1] : vector<32x4xf32> to vector<32xf32>
    %85 = vector.shape_cast %84 : vector<32xf32> to vector<32x1xf32>
    %cst_30 = arith.constant 4.000000e+00 : f32
    %86 = vector.broadcast %cst_30 : f32 to vector<32x1xf32>
    %87 = arith.divf %85, %86 : vector<32x1xf32>
    %88 = vector.broadcast %87 : vector<32x1xf32> to vector<32x4xf32>
    %89 = arith.subf %83, %88 : vector<32x4xf32>
    %90 = arith.mulf %89, %89 : vector<32x4xf32>
    %cst_31 = arith.constant dense<0.000000e+00> : vector<32xf32>
    %91 = vector.multi_reduction <add>, %90, %cst_31 [1] : vector<32x4xf32> to vector<32xf32>
    %92 = vector.shape_cast %91 : vector<32xf32> to vector<32x1xf32>
    %cst_32 = arith.constant 4.000000e+00 : f32
    %93 = vector.broadcast %cst_32 : f32 to vector<32x1xf32>
    %94 = arith.divf %92, %93 : vector<32x1xf32>
    %95 = vector.broadcast %87 : vector<32x1xf32> to vector<32x4xf32>
    %96 = arith.subf %83, %95 : vector<32x4xf32>
    %cst_33 = arith.constant 9.99999974E-6 : f32
    %97 = vector.broadcast %cst_33 : f32 to vector<32x1xf32>
    %98 = arith.addf %94, %97 : vector<32x1xf32>
    %99 = math.rsqrt %98 : vector<32x1xf32>
    %100 = vector.broadcast %99 : vector<32x1xf32> to vector<32x4xf32>
    %101 = arith.mulf %96, %100 : vector<32x4xf32>
    %cst_34 = arith.constant 0.000000e+00 : f32
    %102 = vector.broadcast %cst_34 : f32 to vector<32x4xf32>
    %103 = arith.maximumf %101, %102 : vector<32x4xf32>
    %c0_35 = arith.constant 0 : index
    %c0_36 = arith.constant 0 : index
    %104 = vector.load %arg4[%c0_35, %c0_36] : memref<2x32xf32, #tpu.memory_space<vmem>>, vector<1x32xf32>
    %cst_37 = arith.constant dense<0.000000e+00> : vector<1x4xf32>
    %105 = tpu.matmul %104, %103, %cst_37 {dimension_numbers = #tpu.dot_dimension_numbers<[1], [0], [0], [1], [0, 0, 1, 1], [], []>} : vector<1x32xf32>, vector<32x4xf32>, vector<1x4xf32> -> vector<1x4xf32>
    %106 = arith.negf %105 : vector<1x4xf32>
    %107 = math.exp %106 : vector<1x4xf32>
    %cst_38 = arith.constant 1.000000e+00 : f32
    %108 = vector.broadcast %cst_38 : f32 to vector<1x4xf32>
    %109 = arith.addf %108, %107 : vector<1x4xf32>
    %110 = arith.divf %108, %109 : vector<1x4xf32>
    %c1 = arith.constant 1 : index
    %c0_39 = arith.constant 0 : index
    %111 = vector.load %arg4[%c1, %c0_39] : memref<2x32xf32, #tpu.memory_space<vmem>>, vector<1x4xf32>
    %cst_40 = arith.constant 0.000000e+00 : f32
    %112 = vector.broadcast %cst_40 : f32 to vector<1x4xf32>
    %113 = arith.maximumf %105, %112 : vector<1x4xf32>
    %114 = arith.mulf %105, %111 : vector<1x4xf32>
    %115 = arith.subf %113, %114 : vector<1x4xf32>
    %116 = math.absf %105 : vector<1x4xf32>
    %cst_41 = arith.constant 0.000000e+00 : f32
    %117 = vector.broadcast %cst_41 : f32 to vector<1x4xf32>
    %118 = arith.subf %117, %116 : vector<1x4xf32>
    %119 = math.exp %118 : vector<1x4xf32>
    %120 = math.log1p %119 : vector<1x4xf32>
    %121 = arith.addf %115, %120 : vector<1x4xf32>
    %122 = vector.shape_cast %121 : vector<1x4xf32> to vector<1x1x4xf32>
    %cst_42 = arith.constant dense<0.000000e+00> : vector<1xf32>
    %123 = vector.multi_reduction <add>, %122, %cst_42 [1, 2] : vector<1x1x4xf32> to vector<1xf32>
    %124 = vector.shape_cast %123 : vector<1xf32> to vector<1x1x1xf32>
    %125 = vector.extract %124[0, 0, 0] : f32 from vector<1x1x1xf32>
    %126 = vector.broadcast %125 : f32 to vector<1x1xf32>
    %cst_43 = arith.constant 4.000000e+00 : f32
    %127 = vector.broadcast %cst_43 : f32 to vector<1x1xf32>
    %128 = arith.divf %126, %127 : vector<1x1xf32>
    %c0_44 = arith.constant 0 : index
    %c0_45 = arith.constant 0 : index
    %129 = vector.load %arg5[%c0_44, %c0_45] : memref<1x128xf32, #tpu.memory_space<vmem>>, vector<1x4xf32>
    tpu.vector_store %arg5[%c0_44, %c0_45], %110 {strides = array<i32>} : memref<1x128xf32, #tpu.memory_space<vmem>>, vector<1x4xf32>,
    %c0_46 = arith.constant 0 : index
    %c4 = arith.constant 4 : index
    %130 = vector.load %arg5[%c0_46, %c4] : memref<1x128xf32, #tpu.memory_space<vmem>>, vector<1x1xf32>
    tpu.vector_store %arg5[%c0_46, %c4], %128 {strides = array<i32>} : memref<1x128xf32, #tpu.memory_space<vmem>>, vector<1x1xf32>,
    return
  }
}

</mosaic_0001>

<bundles_post_ra>
// kernel: tpu_custom_call.1
= control target key start
LH: loop header
LB: loop body
LE: loop exit
PB: predicated region body
PF: predicated region fallthrough
CT: control target
= control target key end

     0   :  { %vm29_vm0 = vcmask 31744   ;;  %s3057_s0 = inlined_call_operand.vmem [shape: f32[64,4], index: 0, kind: input, shape index: {}]   ;;  %s3058_s1 = inlined_call_operand.vmem [shape: f32[144,64], index: 1, kind: input, shape index: {}]   ;;  %s3059_s2 = inlined_call_operand.vmem [shape: f32[32,144], index: 2, kind: input, shape index: {}]   ;;  %s3060_s3 = inlined_call_operand.vmem [shape: f32[40,1], index: 3, kind: input, shape index: {}]   ;;  %s3061_s4 = inlined_call_operand.vmem [shape: f32[2,32], index: 4, kind: input, shape index: {}]   ;;  %s3062_s5 = inlined_call_operand.hbm [shape: f32[1,128], index: 5, kind: output, shape index: {}]  }
   0x1   :  { %v2342_v0 = vld [vmem:[%s3057_s0] sm:$0xff]  ;;  %v2347_v1 = vld [vmem:[%s3057_s0 + $0x8] sm:$0xff]  ;;  %v2352_v2 = vld [vmem:[%s3057_s0 + $0x10] sm:$0xff] }
   0x2   :  { %v2357_v3 = vld [vmem:[%s3057_s0 + $0x18] sm:$0xff]  ;;  %v30_v4 = vsel %vm29_vm0, %v2342_v0, 0.0  ;;  %v31_v5 = vsel %vm29_vm0, %v2347_v1, 0.0  ;;  %v33_v6 = vsel %vm29_vm0, %v2352_v2, 0.0  ;;  %v2368_v7 = vld [vmem:[%s3057_s0 + $0x20] sm:$0xff] }
   0x3   :  { %v32_v8 = vadd.f32 %v31_v5, %v30_v4  ;;  %v35_v9 = vsel %vm29_vm0, %v2357_v3, 0.0 }
   0x4   :  { %10 = vsyncpa [#allocation3], 0  ;;  %v2375_v10 = vld [vmem:[%s3057_s0 + $0x28] sm:$0xff]  ;;  %v37_v12 = vsel %vm29_vm0, %v2368_v7, 0.0  ;;  %v2382_v13 = vld [vmem:[%s3057_s0 + $0x30] sm:$0xff]  ;;  %vm310_vm1 = vcmask 1043456   ;;  %v127_v24 = vlaneseq }
   0x5   :  { %v34_v11 = vadd.f32 %v33_v6, %v32_v8  ;;  %v39_v15 = vsel %vm29_vm0, %v2375_v10, 0.0  ;;  %v2389_v16 = vld [vmem:[%s3057_s0 + $0x38] sm:$0xff]  ;;  %v41_v18 = vsel %vm29_vm0, %v2382_v13, 0.0  ;;  %v255_v23 = vld [vmem:[%s3060_s3] sm:$0xf]  ;;  %v2303_v36 = vmov 0.0  }
   0x6   :  { %v43_v20 = vsel %vm29_vm0, %v2389_v16, 0.0  ;;  %2001 = vmatprep.subr.msk.mxu0 %vm310_vm1, %v255_v23  ;;  %v2400_v25 = vshrl.u32 %v127_v24, 7  ;;  %v2402_v26 = vand.u32 127, %v127_v24 }
   0x7   :  { %v36_v14 = vadd.f32 %v35_v9, %v34_v11  ;;  %2002 = vmatpush3.msk.msra.mxu0 %vm310_vm1, %v255_v23 }
   0x8   :  { %v2405_v27 = vmul.u32 36, %v2402_v26  ;;  %v167_v28 = vadd.s32 1, %v2402_v26  ;;  %v129_v29 = vadd.s32 8, %v2400_v25  ;;  %v130_v30 = vadd.s32 16, %v2400_v25 }
   0x9   :  { %v38_v17 = vadd.f32 %v37_v12, %v36_v14  ;;  %v131_v31 = vadd.s32 24, %v2400_v25  ;;  %v132_v33 = vadd.s32 32, %v2400_v25  ;;  %v133_v34 = vadd.s32 40, %v2400_v25 }
   0xa   :  { %vm149_vm2 = vcmp.ge.s32.totalorder %v2400_v25, %v2405_v27  ;;  %v2413_v32 = vmul.u32 36, %v167_v28  ;;  %vm150_vm3 = vcmp.ge.s32.totalorder %v129_v29, %v2405_v27  ;;  %v134_v35 = vadd.s32 48, %v2400_v25 }
   0xb   :  { %v40_v19 = vadd.f32 %v39_v15, %v38_v17  ;;  %vm151_vm6 = vcmp.ge.s32.totalorder %v130_v30, %v2405_v27  ;;  %vm152_vm9 = vcmp.ge.s32.totalorder %v131_v31, %v2405_v27  ;;  %vm153_vm12 = vcmp.ge.s32.totalorder %v132_v33, %v2405_v27 }
   0xc   :  { %vm169_vm4 = vcmp.lt.s32.totalorder %v2400_v25, %v2413_v32  ;;  %vm170_vm5 = vcmp.lt.s32.totalorder %v129_v29, %v2413_v32  ;;  %vm171_vm7 = vcmp.lt.s32.totalorder %v130_v30, %v2413_v32  ;;  %vm172_vm10 = vcmp.lt.s32.totalorder %v131_v31, %v2413_v32 }
   0xd   :  { %v42_v21 = vadd.f32 %v41_v18, %v40_v19  ;;  %vm187_vm8 = vmand %vm149_vm2, %vm169_vm4  ;;  %vm173_vm13 = vcmp.lt.s32.totalorder %v132_v33, %v2413_v32  ;;  %vm154_vm15 = vcmp.ge.s32.totalorder %v133_v34, %v2405_v27  ;;  %vm174_vm2 = vcmp.lt.s32.totalorder %v133_v34, %v2413_v32 }
   0xe   :  { %v2427_v37 = vsel %vm187_vm8, 1.0, %v2303_v36  ;;  %vm188_vm11 = vmand %vm150_vm3, %vm170_vm5  ;;  %v135_v39 = vadd.s32 56, %v2400_v25  ;;  %vm155_vm4 = vcmp.ge.s32.totalorder %v134_v35, %v2405_v27  ;;  %vm175_vm5 = vcmp.lt.s32.totalorder %v134_v35, %v2413_v32 }
   0xf   :  { %v44_v22 = vadd.f32 %v43_v20, %v42_v21  ;;  %2003 = vmatprep.mubr.msk.f32.mxu0 %vm29_vm0, %v2427_v37  ;;  %v2434_v38 = vsel %vm188_vm11, 1.0, %v2303_v36  ;;  %vm189_vm14 = vmand %vm151_vm6, %vm171_vm7  ;;  %v136_v41 = vadd.s32 64, %v2400_v25  ;;  %v137_v44 = vadd.s32 72, %v2400_v25 }
  0x10   :  { %2004 = vmatmul.mubr.msk.f32.vlgmr.msra.gmra.mrb[0].mxu0 %vm29_vm0, %v2434_v38  ;;  %v2442_v40 = vsel %vm189_vm14, 1.0, %v2303_v36  ;;  %vm190_vm3 = vmand %vm152_vm9, %vm172_vm10  ;;  %vm156_vm9 = vcmp.ge.s32.totalorder %v135_v39, %v2405_v27  ;;  %vm176_vm10 = vcmp.lt.s32.totalorder %v135_v39, %v2413_v32  ;;  %v138_v45 = vadd.s32 80, %v2400_v25 }
  0x11   :  { %45 = vadd.xlane.f32.xlu0 %v44_v22  ;;  %2006 = vmatprep.mubr.msk.f32.mxu0 %vm29_vm0, %v2442_v40  ;;  %v2452_v42 = vsel %vm190_vm3, 1.0, %v2303_v36  ;;  %vm191_vm6 = vmand %vm153_vm12, %vm173_vm13  ;;  %vm157_vm11 = vcmp.ge.s32.totalorder %v136_v41, %v2405_v27  ;;  %vm177_vm14 = vcmp.lt.s32.totalorder %v136_v41, %v2413_v32  ;;  %v139_v48 = vadd.s32 88, %v2400_v25 }
  0x12   :  { %v2459_v43 = vsel %vm191_vm6, 1.0, %v2303_v36  ;;  %vm192_vm7 = vmand %vm154_vm15, %vm174_vm2  ;;  %vm158_vm15 = vcmp.ge.s32.totalorder %v137_v44, %v2405_v27  ;;  %vm178_vm2 = vcmp.lt.s32.totalorder %v137_v44, %v2413_v32  ;;  %vm159_vm3 = vcmp.ge.s32.totalorder %v138_v45, %v2405_v27 }
  0x13   :  { %vm193_vm8 = vmand %vm155_vm4, %vm175_vm5  ;;  %v2472_v46 = vsel %vm192_vm7, 1.0, %v2303_v36  ;;  %vm179_vm4 = vcmp.lt.s32.totalorder %v138_v45, %v2413_v32  ;;  %v140_v49 = vadd.s32 96, %v2400_v25  ;;  %vm160_vm7 = vcmp.ge.s32.totalorder %v139_v48, %v2405_v27 }
  0x14   :  { %2007 = vmatmul.mubr.msk.f32.gmra.mrb[2].mxu0 %vm29_vm0, %v2452_v42  ;;  %v2475_v47 = vsel %vm193_vm8, 1.0, %v2303_v36  ;;  %vm194_vm12 = vmand %vm156_vm9, %vm176_vm10  ;;  %vm180_vm8 = vcmp.lt.s32.totalorder %v139_v48, %v2413_v32  ;;  %v141_v52 = vadd.s32 104, %v2400_v25  ;;  %v142_v53 = vadd.s32 112, %v2400_v25 }
  0x15   :  { %2009 = vmatprep.mubr.msk.f32.mxu0 %vm29_vm0, %v2459_v43  ;;  %vm195_vm13 = vmand %vm157_vm11, %vm177_vm14  ;;  %v2488_v50 = vsel %vm194_vm12, 1.0, %v2303_v36  ;;  %vm161_vm9 = vcmp.ge.s32.totalorder %v140_v49, %v2405_v27  ;;  %vm181_vm10 = vcmp.lt.s32.totalorder %v140_v49, %v2413_v32  ;;  %v143_v56 = vadd.s32 120, %v2400_v25 }
  0x16   :  { %v2491_v51 = vsel %vm195_vm13, 1.0, %v2303_v36  ;;  %vm196_vm5 = vmand %vm158_vm15, %vm178_vm2  ;;  %vm162_vm12 = vcmp.ge.s32.totalorder %v141_v52, %v2405_v27  ;;  %vm182_vm13 = vcmp.lt.s32.totalorder %v141_v52, %v2413_v32  ;;  %vm163_vm15 = vcmp.ge.s32.totalorder %v142_v53, %v2405_v27 }
  0x17   :  { %vm197_vm6 = vmand %vm159_vm3, %vm179_vm4  ;;  %v2504_v54 = vsel %vm196_vm5, 1.0, %v2303_v36  ;;  %vm183_vm2 = vcmp.lt.s32.totalorder %v142_v53, %v2413_v32  ;;  %v144_v57 = vadd.s32 128, %v2400_v25  ;;  %vm164_vm5 = vcmp.ge.s32.totalorder %v143_v56, %v2405_v27 }
  0x18   :  { %2010 = vmatmul.mubr.msk.f32.gmra.mrb[4].mxu0 %vm29_vm0, %v2472_v46  ;;  %v2507_v55 = vsel %vm197_vm6, 1.0, %v2303_v36  ;;  %vm198_vm11 = vmand %vm160_vm7, %vm180_vm8  ;;  %vm184_vm6 = vcmp.lt.s32.totalorder %v143_v56, %v2413_v32  ;;  %v145_v60 = vadd.s32 136, %v2400_v25  ;;  %v109_v56 = vld [vmem:[%s3058_s1] sm:$0xff] }
  0x19   :  { %2012 = vmatprep.mubr.msk.f32.mxu0 %vm29_vm0, %v2475_v47  ;;  %vm199_vm14 = vmand %vm161_vm9, %vm181_vm10  ;;  %v2520_v58 = vsel %vm198_vm11, 1.0, %v2303_v36  ;;  %vm165_vm7 = vcmp.ge.s32.totalorder %v144_v57, %v2405_v27  ;;  %vm185_vm8 = vcmp.lt.s32.totalorder %v144_v57, %v2413_v32 }
  0x1a   :  { %v2523_v59 = vsel %vm199_vm14, 1.0, %v2303_v36  ;;  %vm200_vm3 = vmand %vm162_vm12, %vm182_vm13  ;;  %vm166_vm11 = vcmp.ge.s32.totalorder %v145_v60, %v2405_v27  ;;  %vm186_vm14 = vcmp.lt.s32.totalorder %v145_v60, %v2413_v32  ;;  %vm559_vm13 = vcmask 523264  }
  0x1b   :  { %vm201_vm4 = vmand %vm163_vm15, %vm183_vm2  ;;  %v2535_v61 = vsel %vm200_vm3, 1.0, %v2303_v36  ;;  %2046 = vmatprep.mubr.msk.f32.mxu1 %vm559_vm13, %v109_v56  ;;  %vm769_vm15 = vcmask 130048  }
  0x1c   :  { %2013 = vmatmul.mubr.msk.f32.gmra.mrb[6].mxu0 %vm29_vm0, %v2488_v50  ;;  %v2538_v62 = vsel %vm201_vm4, 1.0, %v2303_v36  ;;  %vm202_vm9 = vmand %vm164_vm5, %vm184_vm6 }
  0x1d   :  { %2015 = vmatprep.mubr.msk.f32.mxu0 %vm29_vm0, %v2491_v51  ;;  %vm203_vm10 = vmand %vm165_vm7, %vm185_vm8  ;;  %v2547_v63 = vsel %vm202_vm9, 1.0, %v2303_v36  ;;  %vm843_vm8 = vcmask 27648   ;;  %vm1778_vm9 = vcmask 24576  }
  0x1e   :  { %v2550_v4 = vsel %vm203_vm10, 1.0, %v2303_v36  ;;  %vm204_vm12 = vmand %vm166_vm11, %vm186_vm14  ;;  %vm1792_vm11 = vcmask 32800  }
  0x1f   :  { %v2557_v5 = vsel %vm204_vm12, 1.0, %v2303_v36 }
  0x20   :  { %2016 = vmatmul.mubr.msk.f32.gmra.mrb[8].mxu0 %vm29_vm0, %v2504_v54 }
  0x21   :  { %2018 = vmatprep.mubr.msk.f32.mxu0 %vm29_vm0, %v2507_v55 }
  0x24   :  { %2019 = vmatmul.mubr.msk.f32.gmra.mrb[10].mxu0 %vm29_vm0, %v2520_v58 }
  0x25   :  { %2021 = vmatprep.mubr.msk.f32.mxu0 %vm29_vm0, %v2523_v59 }
  0x28   :  { %2022 = vmatmul.mubr.msk.f32.gmra.mrb[12].mxu0 %vm29_vm0, %v2535_v61 }
  0x29   :  { %2024 = vmatprep.mubr.msk.f32.mxu0 %vm29_vm0, %v2538_v62 }
  0x2c   :  { %2025 = vmatmul.mubr.msk.f32.gmra.mrb[14].mxu0 %vm29_vm0, %v2547_v63 }
  0x2d   :  { %2027 = vmatprep.mubr.msk.f32.mxu0 %vm29_vm0, %v2550_v4 }
  0x30   :  { %2028 = vmatmul.mubr.msk.f32.gmra.mrb[16].mxu0 %vm29_vm0, %v2557_v5 }
  0x9e   :  { %v46_v6 = vpop.xlane.xlu0 %45 }
  0x9f   :  { %v47_v8 = vrot.slane %v46_v6, 4 }
  0xa1   :  { %v48_v9 = vadd.f32 %v47_v8, %v46_v6  ;;  %v2304_v6 = vmov 0  }
  0xa2   :  { %2257 = vset.pattern.permute.xlu1 %v2304_v6  ;;  %2258 = vset.pattern.permute.xlu0 %v2304_v6 }
  0xa3   :  { %v49_v11 = vrot.slane %v48_v9, 2 }
  0xa5   :  { %v50_v12 = vadd.f32 %v49_v11, %v48_v9 }
  0xa7   :  { %v51_v14 = vrot.slane %v50_v12, 1 }
  0xa9   :  { %v52_v15 = vadd.f32 %v51_v14, %v50_v12 }
  0xab   :  { %2245 = vpush %v52_v15 }
  0xdc   :  { %s2246_s0 = spop %2245 }
  0xdd   :  { %v54_v17 = vstv %s2246_s0 }
  0xde   :  { %v56_v18 = vmul.f32 0.00390625, %v54_v17 }
  0xe0   :  { %v2562_v19 = vsub.f32 %v2342_v0, %v56_v18  ;;  %v2565_v20 = vsub.f32 %v2347_v1, %v56_v18  ;;  %v2568_v21 = vsub.f32 %v2352_v2, %v56_v18  ;;  %v2571_v22 = vsub.f32 %v2357_v3, %v56_v18 }
  0xe1   :  { %v2574_v23 = vsub.f32 %v2368_v7, %v56_v18  ;;  %v2583_v1 = vsub.f32 %v2375_v10, %v56_v18  ;;  %v2590_v29 = vsub.f32 %v2382_v13, %v56_v18  ;;  %v2596_v10 = vsub.f32 %v2389_v16, %v56_v18 }
  0xe2   :  { %v65_v24 = vmul.f32 %v2562_v19, %v2562_v19  ;;  %v66_v27 = vmul.f32 %v2565_v20, %v2565_v20  ;;  %v67_v0 = vmul.f32 %v2568_v21, %v2568_v21  ;;  %v68_v2 = vmul.f32 %v2571_v22, %v2571_v22 }
  0xe3   :  { %v69_v30 = vmul.f32 %v2574_v23, %v2574_v23  ;;  %v70_v33 = vmul.f32 %v2583_v1, %v2583_v1  ;;  %v71_v39 = vmul.f32 %v2590_v29, %v2590_v29  ;;  %v72_v44 = vmul.f32 %v2596_v10, %v2596_v10  ;;  %v2005_v57 = vpop.f32.mrb[0].mxu0 }
  0xe4   :  { %v73_v3 = vsel %vm29_vm0, %v65_v24, 0.0  ;;  %v74_v7 = vsel %vm29_vm0, %v66_v27, 0.0  ;;  %v76_v31 = vsel %vm29_vm0, %v67_v0, 0.0  ;;  %v78_v34 = vsel %vm29_vm0, %v68_v2, 0.0  ;;  %v380_v60 = vpop.f32.mrb[1].mxu0 }
  0xe5   :  { %v75_v28 = vadd.f32 %v74_v7, %v73_v3  ;;  %v80_v13 = vsel %vm29_vm0, %v69_v30, 0.0  ;;  %v82_v45 = vsel %vm29_vm0, %v70_v33, 0.0  ;;  %v84_v16 = vsel %vm29_vm0, %v71_v39, 0.0  ;;  %471 = vperm.xlu1 %2257, %v380_v60  }
  0xe6   :  { %v86_v52 = vsel %vm29_vm0, %v72_v44, 0.0 }
  0xe7   :  { %v77_v32 = vadd.f32 %v76_v31, %v75_v28  ;;  %v2008_v8 = vpop.f32.mrb[2].mxu0 }
  0xe8   :  { %v390_v9 = vpop.f32.mrb[3].mxu0 }
  0xe9   :  { %v79_v35 = vadd.f32 %v78_v34, %v77_v32  ;;  %476 = vperm.xlu1 %2257, %v2005_v57  }
  0xeb   :  { %v81_v41 = vadd.f32 %v80_v13, %v79_v35  ;;  %v2011_v11 = vpop.f32.mrb[4].mxu0 }
  0xec   :  { %v400_v12 = vpop.f32.mrb[5].mxu0 }
  0xed   :  { %v83_v48 = vadd.f32 %v82_v45, %v81_v41  ;;  %486 = vperm.xlu1 %2257, %v2008_v8  }
  0xef   :  { %v85_v49 = vadd.f32 %v84_v16, %v83_v48  ;;  %v2014_v14 = vpop.f32.mrb[6].mxu0 }
  0xf0   :  { %v410_v15 = vpop.f32.mrb[7].mxu0 }
  0xf1   :  { %v87_v53 = vadd.f32 %v86_v52, %v85_v49  ;;  %491 = vperm.xlu1 %2257, %v400_v12   ;;  %v117_v12 = vld [vmem:[%s3058_s1 + $0x40] sm:$0xff] }
  0xf3   :  { %88 = vadd.xlane.f32.xlu0 %v87_v53  ;;  %v2017_v17 = vpop.f32.mrb[8].mxu0 }
  0xf4   :  { %v420_v24 = vpop.f32.mrb[9].mxu0 }
  0xf5   :  { %496 = vperm.xlu1 %2257, %v2011_v11   ;;  %v116_v11 = vld [vmem:[%s3058_s1 + $0x38] sm:$0xff] }
  0xf7   :  { %v2020_v2 = vpop.f32.mrb[10].mxu0 }
  0xf8   :  { %v430_v3 = vpop.f32.mrb[11].mxu0 }
  0xf9   :  { %501 = vperm.xlu1 %2257, %v410_v15   ;;  %v119_v15 = vld [vmem:[%s3058_s1 + $0x50] sm:$0xff] }
  0xfb   :  { %v2023_v28 = vpop.f32.mrb[12].mxu0 }
  0xfc   :  { %v440_v30 = vpop.f32.mrb[13].mxu0 }
  0xfd   :  { %506 = vperm.xlu1 %2257, %v2014_v14   ;;  %v118_v14 = vld [vmem:[%s3058_s1 + $0x48] sm:$0xff] }
  0xff   :  { %v2026_v32 = vpop.f32.mrb[14].mxu0 }
 0x100   :  { %v450_v33 = vpop.f32.mrb[15].mxu0 }
 0x101   :  { %511 = vperm.xlu1 %2257, %v420_v24   ;;  %v122_v24 = vld [vmem:[%s3058_s1 + $0x68] sm:$0xff] }
 0x103   :  { %v2029_v35 = vpop.f32.mrb[16].mxu0 }
 0x104   :  { %v460_v39 = vpop.f32.mrb[17].mxu0 }
 0x105   :  { %516 = vperm.xlu1 %2257, %v2017_v17   ;;  %v120_v17 = vld [vmem:[%s3058_s1 + $0x58] sm:$0xff] }
 0x109   :  { %481 = vperm.xlu0 %2258, %v390_v9   ;;  %526 = vperm.xlu1 %2257, %v2020_v2   ;;  %v125_v2 = vld [vmem:[%s3058_s1 + $0x80] sm:$0xff] }
 0x10d   :  { %541 = vperm.xlu0 %2258, %v450_v33   ;;  %521 = vperm.xlu1 %2257, %v430_v3   ;;  %v126_v3 = vld [vmem:[%s3058_s1 + $0x88] sm:$0xff]  ;;  %v1502_v33 = vld [vmem:[%s3060_s3 + $0x10] sm:$0xff] }
 0x111   :  { %551 = vperm.xlu0 %2258, %v460_v39   ;;  %536 = vperm.xlu1 %2257, %v2023_v28   ;;  %v245_v28 = vadd.s32 1, %v2400_v25 }
 0x115   :  { %531 = vperm.xlu1 %2257, %v440_v30   ;;  %v241_v30 = vadd.s32 128, %v2402_v26 }
 0x119   :  { %546 = vperm.xlu1 %2257, %v2026_v32   ;;  %v246_v32 = vmul.u32 36, %v245_v28 }
 0x11b   :  { %vm248_vm3 = vcmp.lt.s32.totalorder %v241_v30, %v246_v32  ;;  %vm2700_vm5 = vcmp.lt.s32.totalorder %v2402_v26, %v246_v32 }
 0x11d   :  { %556 = vperm.xlu1 %2257, %v2029_v35  }
 0x180   :  { %v89_v18 = vpop.xlane.xlu0 %88 }
 0x181   :  { %v90_v27 = vrot.slane %v89_v18, 4 }
 0x183   :  { %v91_v0 = vadd.f32 %v90_v27, %v89_v18  ;;  %v121_v18 = vld [vmem:[%s3058_s1 + $0x60] sm:$0xff]  ;;  %v123_v27 = vld [vmem:[%s3058_s1 + $0x70] sm:$0xff] }
 0x185   :  { %v92_v7 = vrot.slane %v91_v0, 2 }
 0x187   :  { %v93_v31 = vadd.f32 %v92_v7, %v91_v0  ;;  %v124_v0 = vld [vmem:[%s3058_s1 + $0x78] sm:$0xff]  ;;  %v2305_v7 = vmov 0.0|0.0  }
 0x188   :  { %2158 = vmatprep.subr.bf16.mxu0 %v2305_v7 }
 0x189   :  { %v94_v34 = vrot.slane %v93_v31, 1 }
 0x18b   :  { %v95_v13 = vadd.f32 %v94_v34, %v93_v31  ;;  %v242_v31 = vmul.u32 36, %v2400_v25  ;;  %v472_v25 = vpop.permute.xlu1 %471  ;;  %v1504_v34 = vld [vmem:[%s3060_s3 + $0x20] sm:$0xff] }
 0x18d   :  { %2247 = vpush %v95_v13  ;;  %vm244_vm2 = vcmp.ge.s32.totalorder %v241_v30, %v242_v31  ;;  %vm2695_vm4 = vcmp.ge.s32.totalorder %v2402_v26, %v242_v31 }
 0x18e   :  { %vm250_vm6 = vmand %vm244_vm2, %vm248_vm3 }
 0x18f   :  { %v1827_v35 = vsel %vm250_vm6, 1.0, %v2303_v36  ;;  %vm249_vm7 = vmand %vm2695_vm4, %vm2700_vm5  ;;  %v477_v39 = vpop.permute.xlu1 %476 }
 0x190   :  { %1865 = vmatprep.mubr.msk.f32.mxu0 %vm769_vm15, %v1827_v35 }
 0x193   :  { %v487_v13 = vpop.permute.xlu1 %486 }
 0x1be   :  { %s2248_s13 = spop %2247 }
 0x1bf   :  { %v97_v41 = vstv %s2248_s13 }
 0x1c0   :  { %v98_v44 = vmul.f32 0.00390625, %v97_v41  ;;  %v492_v41 = vpop.permute.xlu1 %491 }
 0x1c2   :  { %v99_v45 = vadd.f32 1e-05, %v98_v44 }
 0x1c4   :  { %2259 = vrsqrt.f32 %v99_v45  ;;  %v497_v26 = vpop.permute.xlu1 %496 }
 0x1c8   :  { %v502_v44 = vpop.permute.xlu1 %501 }
 0x1cc   :  { %v507_v45 = vpop.permute.xlu1 %506 }
 0x1ce   :  { %v2260_v48 = vpop.eup %2259 }
 0x1cf   :  { %v101_v16 = vmul.f32 %v2260_v48, %v2562_v19  ;;  %v102_v49 = vmul.f32 %v2260_v48, %v2565_v20  ;;  %v103_v52 = vmul.f32 %v2260_v48, %v2568_v21  ;;  %v104_v53 = vmul.f32 %v2260_v48, %v2571_v22  ;;  %v110_v21 = vld [vmem:[%s3058_s1 + $0x8] sm:$0xff]  ;;  %v111_v22 = vld [vmem:[%s3058_s1 + $0x10] sm:$0xff] }
 0x1d0   :  { %v105_v60 = vmul.f32 %v2260_v48, %v2574_v23  ;;  %v106_v6 = vmul.f32 %v2260_v48, %v2583_v1  ;;  %v107_v9 = vmul.f32 %v2260_v48, %v2590_v29  ;;  %v108_v19 = vmul.f32 %v2260_v48, %v2596_v10  ;;  %v112_v23 = vld [vmem:[%s3058_s1 + $0x18] sm:$0xff]  ;;  %v113_v1 = vld [vmem:[%s3058_s1 + $0x20] sm:$0xff]  ;;  %v114_v29 = vld [vmem:[%s3058_s1 + $0x28] sm:$0xff]  ;;  %v512_v48 = vpop.permute.xlu1 %511 }
 0x1d1   :  { %v2142_v56 = vpack.c.bf16 %v102_v49, %v101_v16  ;;  %v2146_v57 = vpack.c.bf16 %v104_v53, %v103_v52  ;;  %v115_v10 = vld [vmem:[%s3058_s1 + $0x30] sm:$0xff] }
 0x1d2   :  { %v2150_v8 = vpack.c.bf16 %v106_v6, %v105_v60  ;;  %v2154_v20 = vpack.c.bf16 %v108_v19, %v107_v9 }
 0x1d3   :  { %2143 = vmatprep.subr.bf16.mxu1 %v2142_v56 }
 0x1d4   :  { %2145 = vmatpush3.bf16.msra.mxu1 %v2142_v56  ;;  %v517_v16 = vpop.permute.xlu1 %516 }
 0x1d5   :  { %2147 = vmatprep.subr.bf16.mxu1 %v2146_v57 }
 0x1d8   :  { %2149 = vmatpush3.bf16.msra.mxu1 %v2146_v57  ;;  %v527_v56 = vpop.permute.xlu1 %526 }
 0x1d9   :  { %2151 = vmatprep.subr.bf16.mxu1 %v2150_v8 }
 0x1dc   :  { %2153 = vmatpush3.bf16.msra.mxu1 %v2150_v8  ;;  %v482_v8 = vpop.permute.xlu0 %481 }
 0x1dd   :  { %2155 = vmatprep.subr.bf16.mxu1 %v2154_v20 }
 0x1e0   :  { %2157 = vmatpush3.bf16.msra.mxu1 %v2154_v20 }
 0x1e1   :  { %2185 = vmatprep.subr.bf16.mxu1 %v2305_v7 }
 0x1e3   :  { %2047 = vmatmul.mubr.msk.f32.vlgmr.msra.gmra.mrb[0].mxu1 %vm559_vm13, %v110_v21  ;;  %v522_v21 = vpop.permute.xlu1 %521 }
 0x1e4   :  { %2049 = vmatprep.mubr.msk.f32.mxu1 %vm559_vm13, %v111_v22 }
 0x1e7   :  { %2050 = vmatmul.mubr.msk.f32.gmra.mrb[2].mxu1 %vm559_vm13, %v112_v23 }
 0x1e8   :  { %2052 = vmatprep.mubr.msk.f32.mxu1 %vm559_vm13, %v113_v1 }
 0x1eb   :  { %2053 = vmatmul.mubr.msk.f32.gmra.mrb[4].mxu1 %vm559_vm13, %v114_v29 }
 0x1ec   :  { %2055 = vmatprep.mubr.msk.f32.mxu1 %vm559_vm13, %v115_v10 }
 0x1ef   :  { %2056 = vmatmul.mubr.msk.f32.gmra.mrb[6].mxu1 %vm559_vm13, %v116_v11 }
 0x1f0   :  { %2058 = vmatprep.mubr.msk.f32.mxu1 %vm559_vm13, %v117_v12 }
 0x1f3   :  { %2059 = vmatmul.mubr.msk.f32.gmra.mrb[8].mxu1 %vm559_vm13, %v118_v14 }
 0x1f4   :  { %2061 = vmatprep.mubr.msk.f32.mxu1 %vm559_vm13, %v119_v15 }
 0x1f7   :  { %2062 = vmatmul.mubr.msk.f32.gmra.mrb[10].mxu1 %vm559_vm13, %v120_v17  ;;  %v537_v17 = vpop.permute.xlu1 %536 }
 0x1f8   :  { %2064 = vmatprep.mubr.msk.f32.mxu1 %vm559_vm13, %v121_v18 }
 0x1fb   :  { %2065 = vmatmul.mubr.msk.f32.gmra.mrb[12].mxu1 %vm559_vm13, %v122_v24  ;;  %v532_v28 = vpop.permute.xlu1 %531 }
 0x1fc   :  { %2067 = vmatprep.mubr.msk.f32.mxu1 %vm559_vm13, %v123_v27 }
 0x1ff   :  { %2068 = vmatmul.mubr.msk.f32.gmra.mrb[14].mxu1 %vm559_vm13, %v124_v0 }
 0x200   :  { %2070 = vmatprep.mubr.msk.f32.mxu1 %vm559_vm13, %v125_v2 }
 0x203   :  { %2071 = vmatmul.mubr.msk.f32.gmra.mrb[16].mxu1 %vm559_vm13, %v126_v3 }
 0x204   :  { %1886 = vmatprep.mubr.msk.f32.mxu1 %vm769_vm15, %v1827_v35 }
 0x2b6   :  { %v2048_v49 = vpop.f32.mrb[0].mxu1 }
 0x2b7   :  { %v2711_v52 = vadd.f32 %v2048_v49, %v477_v39  ;;  %v680_v53 = vpop.f32.mrb[1].mxu1 }
 0x2b8   :  { %v2713_v57 = vadd.f32 %v680_v53, %v472_v25 }
 0x2ba   :  { %v2159_v60 = vpack.c.bf16 %v2711_v52, %v2713_v57  ;;  %v2051_v6 = vpop.f32.mrb[2].mxu1 }
 0x2bb   :  { %v2717_v9 = vadd.f32 %v2051_v6, %v487_v13  ;;  %v690_v19 = vpop.f32.mrb[3].mxu1 }
 0x2bc   :  { %v2719_v20 = vadd.f32 %v690_v19, %v482_v8  ;;  %2160 = vmatpush1.bf16.msra.mxu0 %v2159_v60 }
 0x2bd   :  { %2161 = vmatprep.subr.bf16.mxu0 %v2305_v7 }
 0x2be   :  { %v2162_v22 = vpack.c.bf16 %v2717_v9, %v2719_v20  ;;  %v2054_v23 = vpop.f32.mrb[4].mxu1 }
 0x2bf   :  { %v2724_v1 = vadd.f32 %v2054_v23, %v497_v26  ;;  %v700_v29 = vpop.f32.mrb[5].mxu1 }
 0x2c0   :  { %v2726_v10 = vadd.f32 %v700_v29, %v492_v41  ;;  %2163 = vmatpush1.bf16.msra.mxu0 %v2162_v22 }
 0x2c1   :  { %2164 = vmatprep.subr.bf16.mxu0 %v2305_v7 }
 0x2c2   :  { %v2165_v11 = vpack.c.bf16 %v2724_v1, %v2726_v10  ;;  %v2057_v12 = vpop.f32.mrb[6].mxu1 }
 0x2c3   :  { %v2731_v14 = vadd.f32 %v2057_v12, %v507_v45  ;;  %v710_v15 = vpop.f32.mrb[7].mxu1  ;;  %v2306_v12 = vmov 1.0  }
 0x2c4   :  { %v2733_v18 = vadd.f32 %v710_v15, %v502_v44  ;;  %2166 = vmatpush1.bf16.msra.mxu0 %v2165_v11  ;;  %v547_v44 = vpop.permute.xlu1 %546 }
 0x2c5   :  { %2167 = vmatprep.subr.bf16.mxu0 %v2305_v7 }
 0x2c6   :  { %v2168_v24 = vpack.c.bf16 %v2731_v14, %v2733_v18  ;;  %v2060_v27 = vpop.f32.mrb[8].mxu1 }
 0x2c7   :  { %v2738_v0 = vadd.f32 %v2060_v27, %v517_v16  ;;  %v720_v2 = vpop.f32.mrb[9].mxu1 }
 0x2c8   :  { %v2740_v3 = vadd.f32 %v720_v2, %v512_v48  ;;  %2169 = vmatpush1.bf16.msra.mxu0 %v2168_v24  ;;  %v542_v48 = vpop.permute.xlu0 %541  ;;  %v557_v6 = vpop.permute.xlu1 %556 }
 0x2c9   :  { %2170 = vmatprep.subr.bf16.mxu0 %v2305_v7 }
 0x2ca   :  { %v2171_v30 = vpack.c.bf16 %v2738_v0, %v2740_v3  ;;  %v2063_v31 = vpop.f32.mrb[10].mxu1 }
 0x2cb   :  { %v2745_v32 = vadd.f32 %v2063_v31, %v527_v56  ;;  %v730_v35 = vpop.f32.mrb[11].mxu1 }
 0x2cc   :  { %v2747_v25 = vadd.f32 %v730_v35, %v522_v21  ;;  %2172 = vmatpush1.bf16.msra.mxu0 %v2171_v30  ;;  %v552_v21 = vpop.permute.xlu0 %551 }
 0x2cd   :  { %2173 = vmatprep.subr.bf16.mxu0 %v2305_v7 }
 0x2ce   :  { %v2174_v39 = vpack.c.bf16 %v2745_v32, %v2747_v25  ;;  %v2066_v13 = vpop.f32.mrb[12].mxu1 }
 0x2cf   :  { %v2752_v41 = vadd.f32 %v2066_v13, %v537_v17  ;;  %v740_v26 = vpop.f32.mrb[13].mxu1 }
 0x2d0   :  { %v2754_v45 = vadd.f32 %v740_v26, %v532_v28  ;;  %2175 = vmatpush1.bf16.msra.mxu0 %v2174_v39 }
 0x2d1   :  { %2176 = vmatprep.subr.bf16.mxu0 %v2305_v7 }
 0x2d2   :  { %v2177_v16 = vpack.c.bf16 %v2752_v41, %v2754_v45  ;;  %v2069_v49 = vpop.f32.mrb[14].mxu1 }
 0x2d3   :  { %v2759_v53 = vadd.f32 %v2069_v49, %v547_v44  ;;  %v750_v56 = vpop.f32.mrb[15].mxu1 }
 0x2d4   :  { %v2761_v60 = vadd.f32 %v750_v56, %v542_v48  ;;  %2178 = vmatpush1.bf16.msra.mxu0 %v2177_v16 }
 0x2d5   :  { %2179 = vmatprep.subr.bf16.mxu0 %v2305_v7 }
 0x2d6   :  { %v2180_v8 = vpack.c.bf16 %v2759_v53, %v2761_v60  ;;  %v2072_v19 = vpop.f32.mrb[16].mxu1 }
 0x2d7   :  { %v2766_v22 = vadd.f32 %v2072_v19, %v557_v6  ;;  %v760_v23 = vpop.f32.mrb[17].mxu1 }
 0x2d8   :  { %v2768_v29 = vadd.f32 %v760_v23, %v552_v21  ;;  %2181 = vmatpush1.bf16.msra.mxu0 %v2180_v8 }
 0x2d9   :  { %2182 = vmatprep.subr.bf16.mxu0 %v2305_v7 }
 0x2da   :  { %v2183_v11 = vpack.c.bf16 %v2766_v22, %v2768_v29 }
 0x2dc   :  { %2184 = vmatpush1.bf16.msra.mxu0 %v2183_v11 }
 0x2df   :  { %1866 = vmatmul.mubr.msk.f32.vlgmr.msra.gmra.mrb[18].mxu0 %vm249_vm7, %v2306_v12 }
 0x2e0   :  { %2075 = vmatprep.mubr.msk.f32.mxu0 %vm29_vm0, %v2427_v37 }
 0x3b2   :  { %v839_v15 = vpop.f32.mrb[18].mxu0 }
 0x3b3   :  { %v841_v17 = vpop.f32.mrb[19].mxu0  ;;  %v844_v24 = vsel %vm843_vm8, %v839_v15, 0.0 }
 0x3b4   :  { %845 = vadd.xlane.f32.xlu0 %v844_v24 }
 0x441   :  { %v846_v27 = vpop.xlane.xlu0 %845 }
 0x442   :  { %v848_v2 = vmul.f32 0.0069444445, %v846_v27 }
 0x444   :  { %2073 = vmatprep.subr.msk.mxu0 %vm310_vm1, %v848_v2 }
 0x445   :  { %2074 = vmatpush3.msk.msra.mxu0 %vm310_vm1, %v848_v2 }
 0x446   :  { %2076 = vmatmul.mubr.msk.f32.vlgmr.msra.gmra.mrb[20].mxu0 %vm29_vm0, %v2434_v38  ;;  %2212 = vmatprep.subr.bf16.mxu0 %v2305_v7 }
 0x447   :  { %2078 = vmatprep.mubr.msk.f32.mxu0 %vm29_vm0, %v2442_v40 }
 0x44a   :  { %2079 = vmatmul.mubr.msk.f32.gmra.mrb[22].mxu0 %vm29_vm0, %v2452_v42 }
 0x44b   :  { %2081 = vmatprep.mubr.msk.f32.mxu0 %vm29_vm0, %v2459_v43 }
 0x44e   :  { %2082 = vmatmul.mubr.msk.f32.gmra.mrb[24].mxu0 %vm29_vm0, %v2472_v46 }
 0x44f   :  { %2084 = vmatprep.mubr.msk.f32.mxu0 %vm29_vm0, %v2475_v47 }
 0x452   :  { %2085 = vmatmul.mubr.msk.f32.gmra.mrb[26].mxu0 %vm29_vm0, %v2488_v50 }
 0x453   :  { %2087 = vmatprep.mubr.msk.f32.mxu0 %vm29_vm0, %v2491_v51 }
 0x456   :  { %2088 = vmatmul.mubr.msk.f32.gmra.mrb[28].mxu0 %vm29_vm0, %v2504_v54 }
 0x457   :  { %2090 = vmatprep.mubr.msk.f32.mxu0 %vm29_vm0, %v2507_v55 }
 0x45a   :  { %2091 = vmatmul.mubr.msk.f32.gmra.mrb[30].mxu0 %vm29_vm0, %v2520_v58 }
 0x45b   :  { %2093 = vmatprep.mubr.msk.f32.mxu0 %vm29_vm0, %v2523_v59 }
 0x45e   :  { %2094 = vmatmul.mubr.msk.f32.gmra.mrb[32].mxu0 %vm29_vm0, %v2535_v61 }
 0x45f   :  { %2096 = vmatprep.mubr.msk.f32.mxu0 %vm29_vm0, %v2538_v62 }
 0x462   :  { %2097 = vmatmul.mubr.msk.f32.gmra.mrb[34].mxu0 %vm29_vm0, %v2547_v63 }
 0x463   :  { %2099 = vmatprep.mubr.msk.f32.mxu0 %vm29_vm0, %v2550_v4 }
 0x466   :  { %2100 = vmatmul.mubr.msk.f32.gmra.mrb[36].mxu0 %vm29_vm0, %v2557_v5 }
 0x519   :  { %v2077_v28 = vpop.f32.mrb[20].mxu0 }
 0x51a   :  { %1014 = vperm.xlu1 %2257, %v2077_v28   ;;  %v918_v30 = vpop.f32.mrb[21].mxu0 }
 0x51d   :  { %v2080_v31 = vpop.f32.mrb[22].mxu0 }
 0x51e   :  { %1009 = vperm.xlu1 %2257, %v918_v30   ;;  %v928_v35 = vpop.f32.mrb[23].mxu0 }
 0x521   :  { %v2083_v39 = vpop.f32.mrb[24].mxu0 }
 0x522   :  { %1024 = vperm.xlu1 %2257, %v2080_v31   ;;  %v938_v13 = vpop.f32.mrb[25].mxu0 }
 0x525   :  { %v2086_v26 = vpop.f32.mrb[26].mxu0 }
 0x526   :  { %1019 = vperm.xlu1 %2257, %v928_v35   ;;  %v948_v44 = vpop.f32.mrb[27].mxu0 }
 0x529   :  { %v2089_v48 = vpop.f32.mrb[28].mxu0 }
 0x52a   :  { %1034 = vperm.xlu1 %2257, %v2083_v39   ;;  %v958_v16 = vpop.f32.mrb[29].mxu0 }
 0x52b   :  { %1049 = vperm.xlu0 %2258, %v958_v16  }
 0x52d   :  { %v2092_v49 = vpop.f32.mrb[30].mxu0 }
 0x52e   :  { %1029 = vperm.xlu1 %2257, %v938_v13   ;;  %v968_v56 = vpop.f32.mrb[31].mxu0 }
 0x531   :  { %v2095_v6 = vpop.f32.mrb[32].mxu0 }
 0x532   :  { %1044 = vperm.xlu1 %2257, %v2086_v26   ;;  %v978_v8 = vpop.f32.mrb[33].mxu0 }
 0x535   :  { %v2098_v19 = vpop.f32.mrb[34].mxu0 }
 0x536   :  { %1039 = vperm.xlu1 %2257, %v948_v44   ;;  %1084 = vperm.xlu0 %2258, %v2098_v19   ;;  %v988_v21 = vpop.f32.mrb[35].mxu0 }
 0x539   :  { %v2101_v23 = vpop.f32.mrb[36].mxu0 }
 0x53a   :  { %1054 = vperm.xlu1 %2257, %v2089_v48   ;;  %1094 = vperm.xlu0 %2258, %v2101_v23   ;;  %v998_v11 = vpop.f32.mrb[37].mxu0 }
 0x53e   :  { %1064 = vperm.xlu1 %2257, %v2092_v49  }
 0x542   :  { %1059 = vperm.xlu1 %2257, %v968_v56  }
 0x546   :  { %1074 = vperm.xlu1 %2257, %v2095_v6  }
 0x54a   :  { %1069 = vperm.xlu1 %2257, %v978_v8  }
 0x54e   :  { %1079 = vperm.xlu1 %2257, %v988_v21  }
 0x552   :  { %1089 = vperm.xlu1 %2257, %v998_v11  }
 0x599   :  { %v1015_v15 = vpop.permute.xlu1 %1014 }
 0x59a   :  { %v2820_v17 = vsub.f32 %v2711_v52, %v1015_v15 }
 0x59c   :  { %v1116_v2 = vmul.f32 %v2820_v17, %v2820_v17 }
 0x59d   :  { %v1010_v24 = vpop.permute.xlu1 %1009 }
 0x59e   :  { %v2823_v27 = vsub.f32 %v2713_v57, %v1010_v24 }
 0x5a0   :  { %v1115_v28 = vmul.f32 %v2823_v27, %v2823_v27 }
 0x5a1   :  { %v1025_v30 = vpop.permute.xlu1 %1024 }
 0x5a2   :  { %v2186_v31 = vpack.c.bf16 %v1116_v2, %v1115_v28  ;;  %v2830_v35 = vsub.f32 %v2717_v9, %v1025_v30 }
 0x5a4   :  { %2187 = vmatpush1.bf16.msra.mxu1 %v2186_v31  ;;  %v1118_v57 = vmul.f32 %v2830_v35, %v2830_v35 }
 0x5a5   :  { %v1020_v39 = vpop.permute.xlu1 %1019  ;;  %2188 = vmatprep.subr.bf16.mxu1 %v2305_v7 }
 0x5a6   :  { %v2834_v52 = vsub.f32 %v2719_v20, %v1020_v39 }
 0x5a8   :  { %v1117_v13 = vmul.f32 %v2834_v52, %v2834_v52 }
 0x5a9   :  { %v1035_v26 = vpop.permute.xlu1 %1034 }
 0x5aa   :  { %v2189_v44 = vpack.c.bf16 %v1118_v57, %v1117_v13  ;;  %v2841_v48 = vsub.f32 %v2724_v1, %v1035_v26  ;;  %v1050_v1 = vpop.permute.xlu0 %1049 }
 0x5ac   :  { %2190 = vmatpush1.bf16.msra.mxu1 %v2189_v44  ;;  %v1120_v20 = vmul.f32 %v2841_v48, %v2841_v48 }
 0x5ad   :  { %v1030_v9 = vpop.permute.xlu1 %1029  ;;  %2191 = vmatprep.subr.bf16.mxu1 %v2305_v7 }
 0x5ae   :  { %v2845_v16 = vsub.f32 %v2726_v10, %v1030_v9  ;;  %v2859_v10 = vsub.f32 %v2740_v3, %v1050_v1 }
 0x5b0   :  { %v1119_v49 = vmul.f32 %v2845_v16, %v2845_v16  ;;  %v1123_v2 = vmul.f32 %v2859_v10, %v2859_v10 }
 0x5b1   :  { %v1045_v56 = vpop.permute.xlu1 %1044 }
 0x5b2   :  { %v2192_v6 = vpack.c.bf16 %v1120_v20, %v1119_v49  ;;  %v2852_v8 = vsub.f32 %v2731_v14, %v1045_v56 }
 0x5b4   :  { %2193 = vmatpush1.bf16.msra.mxu1 %v2192_v6  ;;  %v1122_v23 = vmul.f32 %v2852_v8, %v2852_v8 }
 0x5b5   :  { %v1040_v19 = vpop.permute.xlu1 %1039  ;;  %2194 = vmatprep.subr.bf16.mxu1 %v2305_v7  ;;  %v1085_v44 = vpop.permute.xlu0 %1084 }
 0x5b6   :  { %v2856_v21 = vsub.f32 %v2733_v18, %v1040_v19 }
 0x5b8   :  { %v1121_v11 = vmul.f32 %v2856_v21, %v2856_v21 }
 0x5b9   :  { %v1055_v15 = vpop.permute.xlu1 %1054  ;;  %v1095_v6 = vpop.permute.xlu0 %1094 }
 0x5ba   :  { %v2195_v14 = vpack.c.bf16 %v1122_v23, %v1121_v11  ;;  %v2866_v24 = vsub.f32 %v2738_v0, %v1055_v15 }
 0x5bc   :  { %v1124_v18 = vmul.f32 %v2866_v24, %v2866_v24  ;;  %2196 = vmatpush1.bf16.msra.mxu1 %v2195_v14 }
 0x5bd   :  { %v1065_v3 = vpop.permute.xlu1 %1064  ;;  %2197 = vmatprep.subr.bf16.mxu1 %v2305_v7 }
 0x5be   :  { %v2198_v28 = vpack.c.bf16 %v1124_v18, %v1123_v2  ;;  %v2874_v30 = vsub.f32 %v2745_v32, %v1065_v3 }
 0x5c0   :  { %2199 = vmatpush1.bf16.msra.mxu1 %v2198_v28  ;;  %v1126_v39 = vmul.f32 %v2874_v30, %v2874_v30 }
 0x5c1   :  { %v1060_v31 = vpop.permute.xlu1 %1059  ;;  %2200 = vmatprep.subr.bf16.mxu1 %v2305_v7 }
 0x5c2   :  { %v2878_v0 = vsub.f32 %v2747_v25, %v1060_v31  ;;  %v2892_v25 = vsub.f32 %v2759_v53, %v1085_v44 }
 0x5c4   :  { %v1125_v57 = vmul.f32 %v2878_v0, %v2878_v0  ;;  %v1130_v23 = vmul.f32 %v2892_v25, %v2892_v25 }
 0x5c5   :  { %v1075_v13 = vpop.permute.xlu1 %1074 }
 0x5c6   :  { %v2201_v26 = vpack.c.bf16 %v1126_v39, %v1125_v57  ;;  %v2885_v9 = vsub.f32 %v2752_v41, %v1075_v13  ;;  %v1503_v13 = vld [vmem:[%s3060_s3 + $0x18] sm:$0xff] }
 0x5c8   :  { %2202 = vmatpush1.bf16.msra.mxu1 %v2201_v26  ;;  %v1128_v49 = vmul.f32 %v2885_v9, %v2885_v9  ;;  %v1494_v26 = vld [vmem:[%s3059_s2 + $0x8] sm:$0xff] }
 0x5c9   :  { %v1070_v32 = vpop.permute.xlu1 %1069  ;;  %2203 = vmatprep.subr.bf16.mxu1 %v2305_v7  ;;  %1907 = vmatprep.mubr.msk.f32.mxu0 %vm769_vm15, %v1494_v26 }
 0x5ca   :  { %v2889_v20 = vsub.f32 %v2754_v45, %v1070_v32  ;;  %v2904_v45 = vsub.f32 %v2766_v22, %v1095_v6 }
 0x5cc   :  { %v1127_v56 = vmul.f32 %v2889_v20, %v2889_v20 }
 0x5cd   :  { %v1080_v1 = vpop.permute.xlu1 %1079 }
 0x5ce   :  { %v2204_v41 = vpack.c.bf16 %v1128_v49, %v1127_v56  ;;  %v2899_v19 = vsub.f32 %v2761_v60, %v1080_v1  ;;  %v1132_v60 = vmul.f32 %v2904_v45, %v2904_v45 }
 0x5d0   :  { %v1129_v53 = vmul.f32 %v2899_v19, %v2899_v19  ;;  %2205 = vmatpush1.bf16.msra.mxu1 %v2204_v41 }
 0x5d1   :  { %v1090_v11 = vpop.permute.xlu1 %1089  ;;  %2206 = vmatprep.subr.bf16.mxu1 %v2305_v7 }
 0x5d2   :  { %v2207_v15 = vpack.c.bf16 %v1130_v23, %v1129_v53  ;;  %v2910_v14 = vsub.f32 %v2768_v29, %v1090_v11 }
 0x5d4   :  { %v1131_v2 = vmul.f32 %v2910_v14, %v2910_v14  ;;  %2208 = vmatpush1.bf16.msra.mxu1 %v2207_v15 }
 0x5d5   :  { %2209 = vmatprep.subr.bf16.mxu1 %v2305_v7 }
 0x5d6   :  { %v2210_v22 = vpack.c.bf16 %v1132_v60, %v1131_v2 }
 0x5d8   :  { %2211 = vmatpush1.bf16.msra.mxu1 %v2210_v22 }
 0x5db   :  { %1887 = vmatmul.mubr.msk.f32.vlgmr.msra.gmra.mrb[18].mxu1 %vm249_vm7, %v2306_v12  ;;  %v1501_v12 = vld [vmem:[%s3060_s3 + $0x8] sm:$0xff] }
 0x5dc   :  { %2104 = vmatprep.mubr.msk.f32.mxu1 %vm29_vm0, %v2427_v37 }
 0x6ae   :  { %v1199_v29 = vpop.f32.mrb[18].mxu1 }
 0x6af   :  { %v1201_v18 = vpop.f32.mrb[19].mxu1  ;;  %v1203_v3 = vsel %vm843_vm8, %v1199_v29, 0.0 }
 0x6b0   :  { %1204 = vadd.xlane.f32.xlu1 %v1203_v3 }
 0x73d   :  { %v1205_v28 = vpop.xlane.xlu1 %1204 }
 0x73e   :  { %v1206_v31 = vmul.f32 0.0069444445, %v1205_v28 }
 0x740   :  { %v1207_v39 = vadd.f32 1e-05, %v1206_v31 }
 0x742   :  { %2261 = vrsqrt.f32 %v1207_v39 }
 0x74c   :  { %v2262_v57 = vpop.eup %2261 }
 0x74d   :  { %2102 = vmatprep.subr.msk.mxu1 %vm310_vm1, %v2262_v57 }
 0x74e   :  { %2103 = vmatpush3.msk.msra.mxu1 %vm310_vm1, %v2262_v57  ;;  %vm2307_vm1 = vmmov 0  }
 0x74f   :  { %2105 = vmatmul.mubr.msk.f32.vlgmr.msra.gmra.mrb[20].mxu1 %vm29_vm0, %v2434_v38  ;;  %2239 = vmatprep.subr.bf16.mxu1 %v2305_v7 }
 0x750   :  { %2107 = vmatprep.mubr.msk.f32.mxu1 %vm29_vm0, %v2442_v40 }
 0x753   :  { %2108 = vmatmul.mubr.msk.f32.gmra.mrb[22].mxu1 %vm29_vm0, %v2452_v42 }
 0x754   :  { %2110 = vmatprep.mubr.msk.f32.mxu1 %vm29_vm0, %v2459_v43 }
 0x757   :  { %2111 = vmatmul.mubr.msk.f32.gmra.mrb[24].mxu1 %vm29_vm0, %v2472_v46 }
 0x758   :  { %2113 = vmatprep.mubr.msk.f32.mxu1 %vm29_vm0, %v2475_v47 }
 0x75b   :  { %2114 = vmatmul.mubr.msk.f32.gmra.mrb[26].mxu1 %vm29_vm0, %v2488_v50 }
 0x75c   :  { %2116 = vmatprep.mubr.msk.f32.mxu1 %vm29_vm0, %v2491_v51 }
 0x75f   :  { %2117 = vmatmul.mubr.msk.f32.gmra.mrb[28].mxu1 %vm29_vm0, %v2504_v54 }
 0x760   :  { %2119 = vmatprep.mubr.msk.f32.mxu1 %vm29_vm0, %v2507_v55 }
 0x763   :  { %2120 = vmatmul.mubr.msk.f32.gmra.mrb[30].mxu1 %vm29_vm0, %v2520_v58 }
 0x764   :  { %2122 = vmatprep.mubr.msk.f32.mxu1 %vm29_vm0, %v2523_v59 }
 0x767   :  { %2123 = vmatmul.mubr.msk.f32.gmra.mrb[32].mxu1 %vm29_vm0, %v2535_v61 }
 0x768   :  { %2125 = vmatprep.mubr.msk.f32.mxu1 %vm29_vm0, %v2538_v62 }
 0x76b   :  { %2126 = vmatmul.mubr.msk.f32.gmra.mrb[34].mxu1 %vm29_vm0, %v2547_v63 }
 0x76c   :  { %2128 = vmatprep.mubr.msk.f32.mxu1 %vm29_vm0, %v2550_v4 }
 0x76f   :  { %2129 = vmatmul.mubr.msk.f32.gmra.mrb[36].mxu1 %vm29_vm0, %v2557_v5 }
 0x770   :  { %2139 = vmatprep.mubr.msk.f32.mxu1 %vm2307_vm1, %v2303_v36 }
 0x822   :  { %v2106_v37 = vpop.f32.mrb[20].mxu1 }
 0x823   :  { %1374 = vperm.xlu0 %2258, %v2106_v37   ;;  %v1278_v38 = vpop.f32.mrb[21].mxu1 }
 0x826   :  { %v2109_v40 = vpop.f32.mrb[22].mxu1 }
 0x827   :  { %1369 = vperm.xlu0 %2258, %v1278_v38   ;;  %v1288_v42 = vpop.f32.mrb[23].mxu1 }
 0x82a   :  { %v2112_v43 = vpop.f32.mrb[24].mxu1 }
 0x82b   :  { %1384 = vperm.xlu0 %2258, %v2109_v40   ;;  %v1298_v46 = vpop.f32.mrb[25].mxu1 }
 0x82e   :  { %v2115_v47 = vpop.f32.mrb[26].mxu1 }
 0x82f   :  { %1379 = vperm.xlu0 %2258, %v1288_v42   ;;  %v1308_v50 = vpop.f32.mrb[27].mxu1 }
 0x832   :  { %v2118_v51 = vpop.f32.mrb[28].mxu1 }
 0x833   :  { %1394 = vperm.xlu0 %2258, %v2112_v43   ;;  %1414 = vperm.xlu1 %2257, %v2118_v51   ;;  %v1318_v54 = vpop.f32.mrb[29].mxu1 }
 0x836   :  { %v2121_v55 = vpop.f32.mrb[30].mxu1 }
 0x837   :  { %1389 = vperm.xlu0 %2258, %v1298_v46   ;;  %v1328_v58 = vpop.f32.mrb[31].mxu1 }
 0x83a   :  { %v2124_v59 = vpop.f32.mrb[32].mxu1 }
 0x83b   :  { %1404 = vperm.xlu0 %2258, %v2115_v47   ;;  %v1338_v61 = vpop.f32.mrb[33].mxu1 }
 0x83e   :  { %v2127_v62 = vpop.f32.mrb[34].mxu1 }
 0x83f   :  { %1399 = vperm.xlu0 %2258, %v1308_v50   ;;  %1444 = vperm.xlu1 %2257, %v2127_v62   ;;  %v1348_v63 = vpop.f32.mrb[35].mxu1 }
 0x842   :  { %v2130_v4 = vpop.f32.mrb[36].mxu1 }
 0x843   :  { %1409 = vperm.xlu0 %2258, %v1318_v54   ;;  %1454 = vperm.xlu1 %2257, %v2130_v4   ;;  %v1358_v5 = vpop.f32.mrb[37].mxu1 }
 0x847   :  { %1424 = vperm.xlu0 %2258, %v2121_v55   ;;  %1512 = vperm.xlu1 %2257, %v1502_v33  }
 0x84b   :  { %1419 = vperm.xlu0 %2258, %v1328_v58   ;;  %1522 = vperm.xlu1 %2257, %v1504_v34  }
 0x84f   :  { %1434 = vperm.xlu0 %2258, %v2124_v59  }
 0x853   :  { %1429 = vperm.xlu0 %2258, %v1338_v61  }
 0x857   :  { %1439 = vperm.xlu0 %2258, %v1348_v63  }
 0x85b   :  { %1449 = vperm.xlu0 %2258, %v1358_v5  }
 0x85f   :  { %1507 = vperm.xlu0 %2258, %v1501_v12  }
 0x863   :  { %1517 = vperm.xlu0 %2258, %v1503_v13  }
 0x8a2   :  { %v1375_v44 = vpop.permute.xlu0 %1374 }
 0x8a3   :  { %v1458_v32 = vmul.f32 %v1375_v44, %v2820_v17 }
 0x8a5   :  { %v1476_v6 = vmax.f32 %v1458_v32, 0.0 }
 0x8a6   :  { %v1370_v49 = vpop.permute.xlu0 %1369 }
 0x8a7   :  { %v1457_v56 = vmul.f32 %v1370_v49, %v2823_v27 }
 0x8a9   :  { %v1475_v1 = vmax.f32 %v1457_v56, 0.0 }
 0x8aa   :  { %v1385_v41 = vpop.permute.xlu0 %1384 }
 0x8ab   :  { %v2213_v23 = vpack.c.bf16 %v1476_v6, %v1475_v1  ;;  %v1460_v53 = vmul.f32 %v1385_v41, %v2830_v35  ;;  %v1498_v6 = vld [vmem:[%s3059_s2 + $0x28] sm:$0xff]  ;;  %v1497_v1 = vld [vmem:[%s3059_s2 + $0x20] sm:$0xff]  ;;  %v1500_v41 = vld [vmem:[%s3059_s2 + $0x38] sm:$0xff] }
 0x8ad   :  { %2214 = vmatpush1.bf16.msra.mxu0 %v2213_v23  ;;  %v1478_v60 = vmax.f32 %v1460_v53, 0.0  ;;  %v1499_v23 = vld [vmem:[%s3059_s2 + $0x30] sm:$0xff] }
 0x8ae   :  { %v1380_v11 = vpop.permute.xlu0 %1379  ;;  %2215 = vmatprep.subr.bf16.mxu0 %v2305_v7 }
 0x8af   :  { %v1459_v15 = vmul.f32 %v1380_v11, %v2834_v52 }
 0x8b1   :  { %v1477_v2 = vmax.f32 %v1459_v15, 0.0 }
 0x8b2   :  { %v1395_v22 = vpop.permute.xlu0 %1394  ;;  %v1415_v52 = vpop.permute.xlu1 %1414 }
 0x8b3   :  { %v2216_v29 = vpack.c.bf16 %v1478_v60, %v1477_v2  ;;  %v1462_v17 = vmul.f32 %v1395_v22, %v2841_v48  ;;  %v1466_v48 = vmul.f32 %v1415_v52, %v2866_v24 }
 0x8b5   :  { %2217 = vmatpush1.bf16.msra.mxu0 %v2216_v29  ;;  %v1480_v3 = vmax.f32 %v1462_v17, 0.0  ;;  %v1484_v46 = vmax.f32 %v1466_v48, 0.0 }
 0x8b6   :  { %v1390_v27 = vpop.permute.xlu0 %1389  ;;  %2218 = vmatprep.subr.bf16.mxu0 %v2305_v7 }
 0x8b7   :  { %v1461_v18 = vmul.f32 %v1390_v27, %v2845_v16 }
 0x8b9   :  { %v1479_v35 = vmax.f32 %v1461_v18, 0.0 }
 0x8ba   :  { %v1405_v28 = vpop.permute.xlu0 %1404 }
 0x8bb   :  { %v2219_v31 = vpack.c.bf16 %v1480_v3, %v1479_v35  ;;  %v1464_v39 = vmul.f32 %v1405_v28, %v2852_v8 }
 0x8bd   :  { %2220 = vmatpush1.bf16.msra.mxu0 %v2219_v31  ;;  %v1482_v38 = vmax.f32 %v1464_v39, 0.0 }
 0x8be   :  { %v1400_v57 = vpop.permute.xlu0 %1399  ;;  %2221 = vmatprep.subr.bf16.mxu0 %v2305_v7 }
 0x8bf   :  { %v1463_v37 = vmul.f32 %v1400_v57, %v2856_v21 }
 0x8c1   :  { %v1481_v40 = vmax.f32 %v1463_v37, 0.0 }
 0x8c2   :  { %v1410_v42 = vpop.permute.xlu0 %1409 }
 0x8c3   :  { %v2222_v43 = vpack.c.bf16 %v1482_v38, %v1481_v40  ;;  %v1465_v16 = vmul.f32 %v1410_v42, %v2859_v10  ;;  %v1445_v10 = vpop.permute.xlu1 %1444 }
 0x8c5   :  { %v1483_v47 = vmax.f32 %v1465_v16, 0.0  ;;  %2223 = vmatpush1.bf16.msra.mxu0 %v2222_v43 }
 0x8c6   :  { %v1425_v50 = vpop.permute.xlu0 %1424  ;;  %2224 = vmatprep.subr.bf16.mxu0 %v2305_v7 }
 0x8c7   :  { %v2225_v8 = vpack.c.bf16 %v1484_v46, %v1483_v47  ;;  %v1468_v51 = vmul.f32 %v1425_v50, %v2874_v30  ;;  %v1472_v30 = vmul.f32 %v1445_v10, %v2892_v25  ;;  %v1455_v33 = vpop.permute.xlu1 %1454 }
 0x8c8   :  { %v1474_v26 = vmul.f32 %v1455_v33, %v2904_v45  ;;  %v1496_v45 = vld [vmem:[%s3059_s2 + $0x18] sm:$0xff] }
 0x8c9   :  { %2226 = vmatpush1.bf16.msra.mxu0 %v2225_v8  ;;  %v1486_v24 = vmax.f32 %v1468_v51, 0.0  ;;  %v1490_v13 = vmax.f32 %v1472_v30, 0.0 }
 0x8ca   :  { %v1420_v54 = vpop.permute.xlu0 %1419  ;;  %2227 = vmatprep.subr.bf16.mxu0 %v2305_v7  ;;  %v1492_v49 = vmax.f32 %v1474_v26, 0.0 }
 0x8cb   :  { %v1467_v21 = vmul.f32 %v1420_v54, %v2878_v0  ;;  %v1513_v22 = vpop.permute.xlu1 %1512 }
 0x8cd   :  { %v1485_v55 = vmax.f32 %v1467_v21, 0.0 }
 0x8ce   :  { %v1435_v58 = vpop.permute.xlu0 %1434 }
 0x8cf   :  { %v2228_v59 = vpack.c.bf16 %v1486_v24, %v1485_v55  ;;  %v1470_v61 = vmul.f32 %v1435_v58, %v2885_v9  ;;  %v1523_v52 = vpop.permute.xlu1 %1522 }
 0x8d1   :  { %2229 = vmatpush1.bf16.msra.mxu0 %v2228_v59  ;;  %v1488_v4 = vmax.f32 %v1470_v61, 0.0 }
 0x8d2   :  { %v1430_v62 = vpop.permute.xlu0 %1429  ;;  %2230 = vmatprep.subr.bf16.mxu0 %v2305_v7 }
 0x8d3   :  { %v1469_v63 = vmul.f32 %v1430_v62, %v2889_v20 }
 0x8d5   :  { %v1487_v5 = vmax.f32 %v1469_v63, 0.0 }
 0x8d6   :  { %v1440_v34 = vpop.permute.xlu0 %1439 }
 0x8d7   :  { %v2231_v0 = vpack.c.bf16 %v1488_v4, %v1487_v5  ;;  %v1471_v12 = vmul.f32 %v1440_v34, %v2899_v19  ;;  %v1493_v19 = vld [vmem:[%s3059_s2] sm:$0xff] }
 0x8d9   :  { %v1489_v44 = vmax.f32 %v1471_v12, 0.0  ;;  %2232 = vmatpush1.bf16.msra.mxu0 %v2231_v0 }
 0x8da   :  { %v1450_v9 = vpop.permute.xlu0 %1449  ;;  %2233 = vmatprep.subr.bf16.mxu0 %v2305_v7 }
 0x8db   :  { %v2234_v32 = vpack.c.bf16 %v1490_v13, %v1489_v44  ;;  %v1473_v20 = vmul.f32 %v1450_v9, %v2910_v14  ;;  %v1495_v14 = vld [vmem:[%s3059_s2 + $0x10] sm:$0xff] }
 0x8dd   :  { %v1491_v25 = vmax.f32 %v1473_v20, 0.0  ;;  %2235 = vmatpush1.bf16.msra.mxu0 %v2234_v32 }
 0x8de   :  { %2236 = vmatprep.subr.bf16.mxu0 %v2305_v7  ;;  %v1508_v53 = vpop.permute.xlu0 %1507 }
 0x8df   :  { %v2237_v56 = vpack.c.bf16 %v1492_v49, %v1491_v25 }
 0x8e1   :  { %2238 = vmatpush1.bf16.msra.mxu0 %v2237_v56 }
 0x8e2   :  { %v1518_v3 = vpop.permute.xlu0 %1517 }
 0x8e4   :  { %1602 = vmatmul.mubr.f32.vlgmr.msra.gmra.mrb[38].mxu0 %v1493_v19 }
 0x8e5   :  { %1908 = vmatprep.mubr.msk.f32.mxu0 %vm769_vm15, %v1496_v45 }
 0x8e8   :  { %1607 = vmatmul.mubr.f32.gmra.mrb[40].mxu0 %v1495_v14 }
 0x8e9   :  { %1909 = vmatprep.mubr.msk.f32.mxu0 %vm769_vm15, %v1498_v6 }
 0x8ec   :  { %1612 = vmatmul.mubr.f32.gmra.mrb[42].mxu0 %v1497_v1 }
 0x8ed   :  { %1910 = vmatprep.mubr.msk.f32.mxu0 %vm769_vm15, %v1500_v41 }
 0x8f0   :  { %1617 = vmatmul.mubr.f32.gmra.mrb[44].mxu0 %v1499_v23 }
 0x9b7   :  { %v1603_v11 = vpop.f32.mrb[38].mxu0 }
 0x9b8   :  { %v1604_v15 = vadd.f32 %v1603_v11, %v1508_v53  ;;  %v1605_v60 = vpop.f32.mrb[39].mxu0 }
 0x9b9   :  { %v1679_v60 = vld [vmem:[%s3061_s4] sm:$0x1] }
 0x9ba   :  { %v1622_v2 = vsel %vm29_vm0, %v1604_v15, 0.0 }
 0x9bb   :  { %v1608_v29 = vpop.f32.mrb[40].mxu0  ;;  %1623 = vadd.xlane.f32.xlu0 %v1622_v2 }
 0x9bc   :  { %v1609_v17 = vadd.f32 %v1608_v29, %v1513_v22  ;;  %v1610_v27 = vpop.f32.mrb[41].mxu0 }
 0x9be   :  { %v1625_v18 = vsel %vm29_vm0, %v1609_v17, 0.0 }
 0x9bf   :  { %v1613_v35 = vpop.f32.mrb[42].mxu0  ;;  %1626 = vadd.xlane.f32.xlu1 %v1625_v18 }
 0x9c0   :  { %v1614_v28 = vadd.f32 %v1613_v35, %v1518_v3  ;;  %v1615_v31 = vpop.f32.mrb[43].mxu0 }
 0x9c2   :  { %v1628_v39 = vsel %vm29_vm0, %v1614_v28, 0.0 }
 0x9c3   :  { %v1618_v57 = vpop.f32.mrb[44].mxu0  ;;  %1629 = vadd.xlane.f32.xlu0 %v1628_v39  ;;  %v1760_v39 = vld [vmem:[%s3061_s4 + $0x1] sm:$0x1]  ;;  %s2308_s4 = smov [#allocation2]  }
 0x9c4   :  { %v1619_v37 = vadd.f32 %v1618_v57, %v1523_v52  ;;  %v1620_v48 = vpop.f32.mrb[45].mxu0  ;;  %s1800_s21 = sshll.u32 %s2308_s4, 4  ;;  %s1801_s21 = int_to_ptr.vmem [resolvable:$true] %s1800_s21 }
 0x9c5   :  { %s2279_s22 = scalar_lea.vmem %s1801_s21, 16  ;;  %s2283_s23 = scalar_lea.vmem %s1801_s21, 32 }
 0x9c6   :  { %v1631_v38 = vsel %vm29_vm0, %v1619_v37, 0.0  ;;  %p2280_p0 = scmp.ne.s32.totalorder %s1801_s21, %s2279_s22  ;;  %p2284_p1 = scmp.lt.s32.totalorder %s1801_s21, %s1801_s21 }
 0x9c7   :  { %1632 = vadd.xlane.f32.xlu0 %v1631_v38  ;;  %p2285_p2 = scmp.lt.s32.totalorder %s2283_s23, %s2279_s22 }
 0x9c9   :  { %p2286_p3 = por %p2285_p2, %p2284_p1 }
 0x9cb   :  { %p2287_p4 = pnand %p2286_p3, %p2280_p0 }
 0xa48   :  { %v1624_v40 = vpop.xlane.xlu0 %1623 }
 0xa49   :  { %v1635_v42 = vmul.f32 0.25, %v1624_v40 }
 0xa4b   :  { %v1639_v43 = vsub.f32 %v1604_v15, %v1635_v42 }
 0xa4c   :  { %v1627_v16 = vpop.xlane.xlu1 %1626 }
 0xa4d   :  { %v1636_v46 = vmul.f32 0.25, %v1627_v16  ;;  %v1643_v47 = vmul.f32 %v1639_v43, %v1639_v43 }
 0xa4f   :  { %v1640_v50 = vsub.f32 %v1609_v17, %v1636_v46  ;;  %v1647_v8 = vsel %vm29_vm0, %v1643_v47, 0.0 }
 0xa50   :  { %1648 = vadd.xlane.f32.xlu1 %v1647_v8  ;;  %v1630_v51 = vpop.xlane.xlu0 %1629 }
 0xa51   :  { %v1637_v54 = vmul.f32 0.25, %v1630_v51  ;;  %v1644_v21 = vmul.f32 %v1640_v50, %v1640_v50 }
 0xa53   :  { %v1641_v24 = vsub.f32 %v1614_v28, %v1637_v54  ;;  %v1650_v55 = vsel %vm29_vm0, %v1644_v21, 0.0 }
 0xa54   :  { %1651 = vadd.xlane.f32.xlu0 %v1650_v55  ;;  %v1633_v58 = vpop.xlane.xlu0 %1632 }
 0xa55   :  { %v1638_v59 = vmul.f32 0.25, %v1633_v58  ;;  %v1645_v10 = vmul.f32 %v1641_v24, %v1641_v24 }
 0xa57   :  { %v1642_v61 = vsub.f32 %v1619_v37, %v1638_v59  ;;  %v1653_v62 = vsel %vm29_vm0, %v1645_v10, 0.0 }
 0xa58   :  { %1654 = vadd.xlane.f32.xlu1 %v1653_v62 }
 0xa59   :  { %v1646_v63 = vmul.f32 %v1642_v61, %v1642_v61 }
 0xa5b   :  { %v1656_v30 = vsel %vm29_vm0, %v1646_v63, 0.0  ;;  %vm1680_vm0 = vcmask 261120  }
 0xa5c   :  { %1657 = vadd.xlane.f32.xlu0 %v1656_v30 }
 0xadd   :  { %v1649_v4 = vpop.xlane.xlu1 %1648 }
 0xade   :  { %v1659_v5 = vmul.f32 0.25, %v1649_v4 }
 0xae0   :  { %v1663_v33 = vadd.f32 1e-05, %v1659_v5 }
 0xae1   :  { %v1652_v34 = vpop.xlane.xlu0 %1651 }
 0xae2   :  { %2263 = vrsqrt.f32 %v1663_v33  ;;  %v1660_v0 = vmul.f32 0.25, %v1652_v34 }
 0xae4   :  { %v1664_v12 = vadd.f32 1e-05, %v1660_v0 }
 0xae5   :  { %v1655_v13 = vpop.xlane.xlu1 %1654 }
 0xae6   :  { %2265 = vrsqrt.f32 %v1664_v12  ;;  %v1661_v26 = vmul.f32 0.25, %v1655_v13 }
 0xae8   :  { %v1665_v44 = vadd.f32 1e-05, %v1661_v26 }
 0xae9   :  { %v1658_v9 = vpop.xlane.xlu0 %1657 }
 0xaea   :  { %2267 = vrsqrt.f32 %v1665_v44  ;;  %v1662_v32 = vmul.f32 0.25, %v1658_v9 }
 0xaec   :  { %v2264_v20 = vpop.eup %2263  ;;  %v1666_v49 = vadd.f32 1e-05, %v1662_v32 }
 0xaed   :  { %v1671_v25 = vmul.f32 %v2264_v20, %v1639_v43 }
 0xaee   :  { %2269 = vrsqrt.f32 %v1666_v49 }
 0xaef   :  { %v1675_v19 = vmax.f32 %v1671_v25, 0.0 }
 0xaf0   :  { %v2266_v56 = vpop.eup %2265 }
 0xaf1   :  { %v1672_v36 = vmul.f32 %v2266_v56, %v1640_v50 }
 0xaf3   :  { %v1676_v45 = vmax.f32 %v1672_v36, 0.0 }
 0xaf4   :  { %v2268_v14 = vpop.eup %2267 }
 0xaf5   :  { %v2240_v6 = vpack.c.bf16 %v1676_v45, %v1675_v19  ;;  %v1673_v1 = vmul.f32 %v2268_v14, %v1641_v24 }
 0xaf7   :  { %2241 = vmatpush3.bf16.msra.mxu1 %v2240_v6  ;;  %v1677_v53 = vmax.f32 %v1673_v1, 0.0 }
 0xaf8   :  { %v2270_v41 = vpop.eup %2269  ;;  %2242 = vmatprep.subr.bf16.mxu1 %v2305_v7 }
 0xaf9   :  { %v1674_v23 = vmul.f32 %v2270_v41, %v1642_v61 }
 0xafb   :  { %v1678_v11 = vmax.f32 %v1674_v23, 0.0 }
 0xafd   :  { %v2243_v15 = vpack.c.bf16 %v1678_v11, %v1677_v53 }
 0xaff   :  { %2244 = vmatpush3.bf16.msra.mxu1 %v2243_v15 }
 0xb02   :  { %2140 = vmatmul.mubr.msk.f32.vlgmr.msra.gmra.mrb[38].mxu1 %vm1680_vm0, %v1679_v60 }
 0xbd5   :  { %v1750_v2 = vpop.f32.mrb[38].mxu1 }
 0xbd6   :  { %v1912_v22 = vmul.f32 -1.442695, %v1750_v2  ;;  %v1764_v29 = vand.u32 2147483647, %v1750_v2  ;;  %v2141_v17 = vpop.f32.mrb[39].mxu1  ;;  %v1761_v37 = vmax.f32 %v1750_v2, 0.0  ;;  %v1762_v48 = vmul.f32 %v1760_v39, %v1750_v2 }
 0xbd8   :  { %2271 = vpow2.f32 %v1912_v22  ;;  %v1765_v27 = vsub.f32 0.0, %v1764_v29  ;;  %v1763_v16 = vsub.f32 %v1761_v37, %v1762_v48 }
 0xbda   :  { %v1766_v18 = vmul.f32 1.442695, %v1765_v27 }
 0xbdc   :  { %2273 = vpow2.f32 %v1766_v18 }
 0xbe2   :  { %v2272_v7 = vpop.eup %2271 }
 0xbe3   :  { %v1757_v3 = vadd.f32 1.0, %v2272_v7 }
 0xbe5   :  { %2275 = vrcp.f32 %v1757_v3 }
 0xbe6   :  { %v2274_v35 = vpop.eup %2273 }
 0xbe7   :  { %v1768_v28 = vadd.f32 1.0, %v2274_v35  ;;  %v1771_v31 = vmul.f32 -0.5, %v2274_v35  ;;  %v1774_v38 = vand.u32 2147483647, %v2274_v35 }
 0xbe9   :  { %2277 = vlog2.f32 %v1768_v28  ;;  %v1772_v57 = vadd.f32 1.0, %v1771_v31  ;;  %vm1775_vm10 = vcmp.lt.f32.partialorder %v1774_v38, 0.0004427343 }
 0xbeb   :  { %v1773_v43 = vmul.f32 %v2274_v35, %v1772_v57 }
 0xbef   :  { %v2276_v52 = vpop.eup %2275 }
 0xbf0   :  { %1791 = vst.msk [vmem:[#allocation2] sm:$0x1] %vm1778_vm9, %v2276_v52 }
 0xbf3   :  { %v2278_v40 = vpop.eup %2277 }
 0xbf4   :  { %v1770_v42 = vmul.f32 0.6931472, %v2278_v40 }
 0xbf6   :  { %v1776_v46 = vsel %vm1775_vm10, %v1773_v43, %v1770_v42 }
 0xbf7   :  { %v1777_v47 = vadd.f32 %v1776_v46, %v1763_v16 }
 0xbf9   :  { %v1779_v50 = vsel %vm1778_vm9, %v1777_v47, 0.0 }
 0xbfa   :  { %1780 = vadd.xlane.f32.xlu1 %v1779_v50 }
 0xc87   :  { %v1781_v8 = vpop.xlane.xlu1 %1780 }
 0xc88   :  { %v1782_v51 = vrot.slane %v1781_v8, 4 }
 0xc8a   :  { %v1783_v54 = vadd.f32 %v1782_v51, %v1781_v8 }
 0xc8c   :  { %v1784_v21 = vrot.slane %v1783_v54, 2 }
 0xc8e   :  { %v1785_v24 = vadd.f32 %v1784_v21, %v1783_v54 }
 0xc90   :  { %v1786_v55 = vrot.slane %v1785_v24, 1 }
 0xc92   :  { %v1787_v58 = vadd.f32 %v1786_v55, %v1785_v24 }
 0xc94   :  { %2249 = vpush %v1787_v58 }
 0xcc5   :  { %s2250_s1 = spop %2249 }
 0xcc6   :  { %v1789_v59 = vstv %s2250_s1 }
 0xcc7   :  { %v1790_v10 = vmul.f32 0.25, %v1789_v59 }
 0xcc9   :  { %1793 = vst.msk [vmem:[#allocation2] sm:$0x1] %vm1792_vm11, %v1790_v10 }
 0xcca   :  { %2290 = shalt.err (!%p2287_p4)
}
 0xccb   :  { %s2291_s26 = scalar_lea.hbm %s3062_s5, 16 }
 0xccc   :  { %p2292_p5 = scmp.ne.s32.totalorder %s3062_s5, %s2291_s26  ;;  %p2295_p6 = scmp.lt.u32.totalorder %s2291_s26, %s3062_s5 }
 0xcce   :  { %p2297_p7 = pnand %p2295_p6, %p2292_p5 }
 0xcd0   :  { %2300 = shalt.err (!%p2297_p7)
}
 0xcd1   :  { %1803 = dma.vmem_to_hbm [thread:$0]  %s1801_s21, 16, %s3062_s5, [#allocation3]  }
 0xcd2   :  { %2301 = dma.done.wait [#allocation3], 16  }
 0xcd3   :  { %2302 = vsyncadd [#allocation3], 4294967280 }
 0xcd4   :  { %1807 = vsyncpa [#allocation3], 1 }

</bundles_post_ra>
